<compile_context>
chip_gen: v7x
topology: tpu7x:2x2x1
jax: 0.10.0
libtpu: 0.0.40
codegen_flags: <defaults>
</compile_context>

<pallas_src>
import functools

import jax
import jax.numpy as jnp
from jax import lax
from jax.experimental import pallas as pl
from jax.experimental.pallas import tpu as pltpu

NEG_SLOPE = 0.01   # nn.LeakyReLU default
BN_EPS = 1e-5      # nn.BatchNorm2d default


def _pick_batch_per_step(B, L, target_m=256):
    """Images packed per grid step: maximize MXU M-fill (bp*L) up to target_m.

    Per the perf review: each grid step carries ~0.35 us fixed overhead, so at
    tiny per-step work we never split below target_m just to create more
    steps.  target_m=256 matches the v6e/v7x 256-wide MXU and is an exact
    multiple of v5e's 128."""
    best = 1
    for d in range(1, B + 1):
        if B % d == 0 and d * L <= target_m:
            best = d
    return best


def _gate_attn_kernel(x_ref, wf_ref, wa_ref, bf_ref, ba_ref, out_ref, pad_ref,
                      *, H, W, C, bp):
    """One grid step = `bp` images.

    x_ref:   (bp, L, C)        input tokens
    wf_ref:  (9, C, C)  bf16   conv weight (features branch), BN scale folded
    wa_ref:  (9, C, C)  bf16   conv weight (atten branch),    BN scale folded
    bf_ref:  (1, C)     f32    folded BN shift (features branch)
    ba_ref:  (1, C)     f32    folded BN shift (atten branch)
    out_ref: (bp, L, C)        gated output tokens
    pad_ref: (bp, H+2, W+2, C) bf16 VMEM scratch, zero-padded NHWC input
    """
    # Zero the padded scratch ONCE.  The interior is fully rewritten every
    # step; only the 1-px halo must stay zero, and scratch persists across the
    # (sequential, "arbitrary") grid steps.
    @pl.when(pl.program_id(0) == 0)
    def _():
        pad_ref[...] = jnp.zeros_like(pad_ref)

    # Load tokens, view as NHWC, cast to bf16 for the MXU (f32 accumulation).
    x = x_ref[...].astype(pad_ref.dtype).reshape(bp, H, W, C)
    pad_ref[:, 1:H + 1, 1:W + 1, :] = x
    xp = pad_ref[...]                                    # (bp, H+2, W+2, C)

    M = bp * H * W
    wf = wf_ref[...]                                     # (9, C, C) bf16
    wa = wa_ref[...]

    if C % 128 == 0:
        # Lane-tile-aligned channels: one big im2col matmul per branch.
        taps = [xp[:, dy:dy + H, dx:dx + W, :]
                for dy in range(3) for dx in range(3)]
        patches = jnp.concatenate(taps, axis=-1).reshape(M, 9 * C)
        yf = jnp.dot(patches, wf.reshape(9 * C, C),
                     preferred_element_type=jnp.float32)
        ya = jnp.dot(patches, wa.reshape(9 * C, C),
                     preferred_element_type=jnp.float32)
    else:
        # Small C (e.g. 32): a 9-tap channel concat would force 32-lane XLU
        # shuffles and a non-lane-aligned (..., 9C) reshape.  Instead
        # accumulate 9 small dots per branch into f32 accumulators; each tap
        # reshape is last-dim-preserved (no cross-lane relayout).
        yf = jnp.zeros((M, C), jnp.float32)
        ya = jnp.zeros((M, C), jnp.float32)
        k = 0
        for dy in range(3):
            for dx in range(3):
                tap = xp[:, dy:dy + H, dx:dx + W, :].reshape(M, C)
                yf = yf + jnp.dot(tap, wf[k],
                                  preferred_element_type=jnp.float32)
                ya = ya + jnp.dot(tap, wa[k],
                                  preferred_element_type=jnp.float32)
                k += 1

    # Folded-BN shift + LeakyReLU(0.01) + sigmoid gate.  f32 epilogue is safe
    # on all generations (v5e has no bf16 VPU/EUP) and the data here is tiny.
    yf = yf + bf_ref[...]
    ya = ya + ba_ref[...]
    f = jnp.maximum(yf, NEG_SLOPE * yf)                  # LeakyReLU, 2 VALU ops
    a = jnp.maximum(ya, NEG_SLOPE * ya)
    gated = f * jax.nn.sigmoid(a)

    # Store as (bp, L, C) directly: at small C the masked vst is cheaper than
    # a sublane->lane repack to a 128-lane slab (perf review item).
    out_ref[...] = gated.astype(out_ref.dtype).reshape(out_ref.shape)


def gate_attention_layer(x_tokens, params, input_resolution):
    """x_tokens: (B, H*W, C) -> (B, H*W, C)."""
    H, W = input_resolution
    B, L, C = x_tokens.shape
    assert L == H * W

    # Fold eval-mode BatchNorm into the conv weights (per-out-channel scale)
    # and a bias row (shift).  Keep the two branches as separate (9, C, C)
    # weights so the kernel never has to slice an f/a column group mid-vreg.
    def fold(w_hwio, bn):
        gamma, beta, mean, var = bn
        s = gamma / jnp.sqrt(var + BN_EPS)
        w = (w_hwio * s).reshape(9, C, C).astype(jnp.bfloat16)
        b = (beta - mean * s).reshape(1, C).astype(jnp.float32)
        return w, b

    wf, bf = fold(params["w1"], params["bn1"])
    wa, ba = fold(params["w2"], params["bn2"])

    bp = _pick_batch_per_step(B, L)
    steps = B // bp

    kernel = functools.partial(_gate_attn_kernel, H=H, W=W, C=C, bp=bp)

    # Advisory cost so XLA can overlap this small custom call with neighbors.
    cost = pl.CostEstimate(
        flops=int(2 * B * H * W * (9 * C) * (2 * C)),
        transcendentals=int(B * H * W * C),
        bytes_accessed=int(2 * x_tokens.size * x_tokens.dtype.itemsize
                           + (wf.size + wa.size) * 2 + (bf.size + ba.size) * 4),
    )

    out = pl.pallas_call(
        kernel,
        out_shape=jax.ShapeDtypeStruct((B, L, C), x_tokens.dtype),
        grid=(steps,),
        in_specs=[
            pl.BlockSpec((bp, L, C), lambda b: (b, 0, 0)),
            # Grid-invariant operands (constant index_map -> kept resident).
            # TODO(synk): at C >= 256 mark these pl.Buffered(1) / preload to a
            # persistent scratch to reclaim VMEM on v7x's 64 MiB part.
            pl.BlockSpec((9, C, C), lambda b: (0, 0, 0)),
            pl.BlockSpec((9, C, C), lambda b: (0, 0, 0)),
            pl.BlockSpec((1, C), lambda b: (0, 0)),
            pl.BlockSpec((1, C), lambda b: (0, 0)),
        ],
        out_specs=pl.BlockSpec((bp, L, C), lambda b: (b, 0, 0)),
        scratch_shapes=[pltpu.VMEM((bp, H + 2, W + 2, C), jnp.bfloat16)],
        # "arbitrary": strictly sequential on one core, which makes the
        # once-only scratch zeroing safe; per-step work here is far too small
        # to benefit from a megacore split anyway.
        compiler_params=pltpu.CompilerParams(
            dimension_semantics=("arbitrary",)),
        cost_estimate=cost,
    )(x_tokens, wf, wa, bf, ba)

    return out


def gate_attention_layer_ref(x_tokens, params, input_resolution):
    """Plain-JAX f32 reference (matches PyTorch eval-mode forward)."""
    H, W = input_resolution
    B, L, C = x_tokens.shape
    x = x_tokens.reshape(B, H, W, C)

    def conv_bn_act(x, w_hwio, bn):
        gamma, beta, mean, var = bn
        y = lax.conv_general_dilated(
            x, w_hwio, (1, 1), "SAME",
            dimension_numbers=("NHWC", "HWIO", "NHWC"))
        y = (y - mean) / jnp.sqrt(var + BN_EPS) * gamma + beta
        return jnp.where(y >= 0, y, NEG_SLOPE * y)

    f = conv_bn_act(x, params["w1"], params["bn1"])
    a = conv_bn_act(x, params["w2"], params["bn2"])
    return (f * jax.nn.sigmoid(a)).reshape(B, H * W, C)


if __name__ == "__main__":
    B, H, W, C = 2, 8, 8, 32   # input_resolution=(8,8), dim=32
    key = jax.random.PRNGKey(0)
    kx, k1, k2, kg1, kb1, km1, kv1, kg2, kb2, km2, kv2 = jax.random.split(key, 11)

    x_tokens = jax.random.normal(kx, (B, H * W, C), jnp.float32)

    # Deterministic synthetic parameters (conv weights stored HWIO).
    params = {
        "w1": 0.1 * jax.random.normal(k1, (3, 3, C, C), jnp.float32),
        "w2": 0.1 * jax.random.normal(k2, (3, 3, C, C), jnp.float32),
        "bn1": (jax.random.uniform(kg1, (C,), minval=0.5, maxval=1.5),
                0.1 * jax.random.normal(kb1, (C,)),
                0.1 * jax.random.normal(km1, (C,)),
                jax.random.uniform(kv1, (C,), minval=0.5, maxval=1.5)),
        "bn2": (jax.random.uniform(kg2, (C,), minval=0.5, maxval=1.5),
                0.1 * jax.random.normal(kb2, (C,)),
                0.1 * jax.random.normal(km2, (C,)),
                jax.random.uniform(kv2, (C,), minval=0.5, maxval=1.5)),
    }

    out = jax.block_until_ready(gate_attention_layer(x_tokens, params, (H, W)))
    ref = gate_attention_layer_ref(x_tokens, params, (H, W))

    assert out.shape == (B, H * W, C)
    # Tolerance reflects bf16 MXU operands (f32 accumulation / f32 epilogue)
    # vs the pure-f32 reference; expected max error is ~3e-2 at K=9C=288.
    assert jnp.allclose(out, ref, atol=8e-2, rtol=5e-2), (
        "mismatch vs reference (max abs err "
        f"{float(jnp.max(jnp.abs(out - ref))):.3e})")

    print("KERNEL_OK")
</pallas_src>

<mosaic_0001>
module attributes {stable_mosaic.version = 11 : i64} {
  func.func @_gate_attn_kernel(%arg0: i32, %arg1: memref<2x64x32xf32, #tpu.memory_space<vmem>>, %arg2: memref<9x32x32xbf16, #tpu.memory_space<vmem>>, %arg3: memref<9x32x32xbf16, #tpu.memory_space<vmem>>, %arg4: memref<1x32xf32, #tpu.memory_space<vmem>>, %arg5: memref<1x32xf32, #tpu.memory_space<vmem>>, %arg6: memref<2x64x32xf32, #tpu.memory_space<vmem>>, %arg7: memref<2x10x10x32xbf16, #tpu.memory_space<vmem>>) attributes {dimension_semantics = [#tpu.dimension_semantics<arbitrary>], iteration_bounds = array<i64: 1>, scalar_prefetch = 0 : i64, scratch_operands = 1 : i64, tpu.core_type = #tpu.core_type<tc>, window_params = [{transform_indices = @transform_0, window_bounds = array<i64: 2, 64, 32>}, {pipeline_mode = #tpu.pipeline_mode<synchronous>, transform_indices = @transform_1, window_bounds = array<i64: 9, 32, 32>}, {pipeline_mode = #tpu.pipeline_mode<synchronous>, transform_indices = @transform_2, window_bounds = array<i64: 9, 32, 32>}, {pipeline_mode = #tpu.pipeline_mode<synchronous>, transform_indices = @transform_3, window_bounds = array<i64: 1, 32>}, {pipeline_mode = #tpu.pipeline_mode<synchronous>, transform_indices = @transform_4, window_bounds = array<i64: 1, 32>}, {transform_indices = @transform_5, window_bounds = array<i64: 2, 64, 32>}]} {
    %c0_i32 = arith.constant 0 : i32
    %0 = arith.cmpi eq, %arg0, %c0_i32 : i32
    %1 = arith.extui %0 : i1 to i32
    %c0_i32_0 = arith.constant 0 : i32
    %2 = arith.cmpi ne, %1, %c0_i32_0 : i32
    scf.if %2 {
      %cst_45 = arith.constant 0.000000e+00 : bf16
      %122 = vector.broadcast %cst_45 : bf16 to vector<2x10x10x32xbf16>
      %c0_46 = arith.constant 0 : index
      %c0_47 = arith.constant 0 : index
      %c0_48 = arith.constant 0 : index
      %c0_49 = arith.constant 0 : index
      %123 = vector.load %arg7[%c0_46, %c0_47, %c0_48, %c0_49] : memref<2x10x10x32xbf16, #tpu.memory_space<vmem>>, vector<2x10x10x32xbf16>
      tpu.vector_store %arg7[%c0_46, %c0_47, %c0_48, %c0_49], %122 {strides = array<i32>} : memref<2x10x10x32xbf16, #tpu.memory_space<vmem>>, vector<2x10x10x32xbf16>,
    } else {
    }
    %c0 = arith.constant 0 : index
    %c0_1 = arith.constant 0 : index
    %c0_2 = arith.constant 0 : index
    %3 = vector.load %arg1[%c0, %c0_1, %c0_2] : memref<2x64x32xf32, #tpu.memory_space<vmem>>, vector<2x64x32xf32>
    %4 = arith.truncf %3 : vector<2x64x32xf32> to vector<2x64x32xbf16>
    %5 = vector.shape_cast %4 : vector<2x64x32xbf16> to vector<2x8x8x32xbf16>
    %c0_3 = arith.constant 0 : index
    %c1 = arith.constant 1 : index
    %c1_4 = arith.constant 1 : index
    %c0_5 = arith.constant 0 : index
    %6 = vector.load %arg7[%c0_3, %c1, %c1_4, %c0_5] : memref<2x10x10x32xbf16, #tpu.memory_space<vmem>>, vector<2x8x8x32xbf16>
    tpu.vector_store %arg7[%c0_3, %c1, %c1_4, %c0_5], %5 {strides = array<i32>} : memref<2x10x10x32xbf16, #tpu.memory_space<vmem>>, vector<2x8x8x32xbf16>,
    %c0_6 = arith.constant 0 : index
    %c0_7 = arith.constant 0 : index
    %c0_8 = arith.constant 0 : index
    %c0_9 = arith.constant 0 : index
    %7 = vector.load %arg7[%c0_6, %c0_7, %c0_8, %c0_9] : memref<2x10x10x32xbf16, #tpu.memory_space<vmem>>, vector<2x10x10x32xbf16>
    %c0_10 = arith.constant 0 : index
    %c0_11 = arith.constant 0 : index
    %c0_12 = arith.constant 0 : index
    %8 = vector.load %arg2[%c0_10, %c0_11, %c0_12] : memref<9x32x32xbf16, #tpu.memory_space<vmem>>, vector<9x32x32xbf16>
    %c0_13 = arith.constant 0 : index
    %c0_14 = arith.constant 0 : index
    %c0_15 = arith.constant 0 : index
    %9 = vector.load %arg3[%c0_13, %c0_14, %c0_15] : memref<9x32x32xbf16, #tpu.memory_space<vmem>>, vector<9x32x32xbf16>
    %cst = arith.constant 0.000000e+00 : f32
    %10 = vector.broadcast %cst : f32 to vector<128x32xf32>
    %cst_16 = arith.constant 0.000000e+00 : f32
    %11 = vector.broadcast %cst_16 : f32 to vector<128x32xf32>
    %12 = vector.extract_strided_slice %7 {offsets = [0, 0, 0, 0], sizes = [2, 8, 8, 32], strides = [1, 1, 1, 1]} : vector<2x10x10x32xbf16> to vector<2x8x8x32xbf16>
    %13 = vector.shape_cast %12 : vector<2x8x8x32xbf16> to vector<128x32xbf16>
    %14 = vector.extract_strided_slice %8 {offsets = [0, 0, 0], sizes = [1, 32, 32], strides = [1, 1, 1]} : vector<9x32x32xbf16> to vector<1x32x32xbf16>
    %15 = vector.shape_cast %14 : vector<1x32x32xbf16> to vector<32x32xbf16>
    %cst_17 = arith.constant dense<0.000000e+00> : vector<128x32xf32>
    %16 = tpu.matmul %13, %15, %cst_17 {dimension_numbers = #tpu.dot_dimension_numbers<[1], [0], [0], [1], [0, 0, 1, 1], [], []>} : vector<128x32xbf16>, vector<32x32xbf16>, vector<128x32xf32> -> vector<128x32xf32>
    %17 = arith.addf %10, %16 : vector<128x32xf32>
    %18 = vector.extract_strided_slice %9 {offsets = [0, 0, 0], sizes = [1, 32, 32], strides = [1, 1, 1]} : vector<9x32x32xbf16> to vector<1x32x32xbf16>
    %19 = vector.shape_cast %18 : vector<1x32x32xbf16> to vector<32x32xbf16>
    %cst_18 = arith.constant dense<0.000000e+00> : vector<128x32xf32>
    %20 = tpu.matmul %13, %19, %cst_18 {dimension_numbers = #tpu.dot_dimension_numbers<[1], [0], [0], [1], [0, 0, 1, 1], [], []>} : vector<128x32xbf16>, vector<32x32xbf16>, vector<128x32xf32> -> vector<128x32xf32>
    %21 = arith.addf %11, %20 : vector<128x32xf32>
    %22 = vector.extract_strided_slice %7 {offsets = [0, 0, 1, 0], sizes = [2, 8, 8, 32], strides = [1, 1, 1, 1]} : vector<2x10x10x32xbf16> to vector<2x8x8x32xbf16>
    %23 = vector.shape_cast %22 : vector<2x8x8x32xbf16> to vector<128x32xbf16>
    %24 = vector.extract_strided_slice %8 {offsets = [1, 0, 0], sizes = [1, 32, 32], strides = [1, 1, 1]} : vector<9x32x32xbf16> to vector<1x32x32xbf16>
    %25 = vector.shape_cast %24 : vector<1x32x32xbf16> to vector<32x32xbf16>
    %cst_19 = arith.constant dense<0.000000e+00> : vector<128x32xf32>
    %26 = tpu.matmul %23, %25, %cst_19 {dimension_numbers = #tpu.dot_dimension_numbers<[1], [0], [0], [1], [0, 0, 1, 1], [], []>} : vector<128x32xbf16>, vector<32x32xbf16>, vector<128x32xf32> -> vector<128x32xf32>
    %27 = arith.addf %17, %26 : vector<128x32xf32>
    %28 = vector.extract_strided_slice %9 {offsets = [1, 0, 0], sizes = [1, 32, 32], strides = [1, 1, 1]} : vector<9x32x32xbf16> to vector<1x32x32xbf16>
    %29 = vector.shape_cast %28 : vector<1x32x32xbf16> to vector<32x32xbf16>
    %cst_20 = arith.constant dense<0.000000e+00> : vector<128x32xf32>
    %30 = tpu.matmul %23, %29, %cst_20 {dimension_numbers = #tpu.dot_dimension_numbers<[1], [0], [0], [1], [0, 0, 1, 1], [], []>} : vector<128x32xbf16>, vector<32x32xbf16>, vector<128x32xf32> -> vector<128x32xf32>
    %31 = arith.addf %21, %30 : vector<128x32xf32>
    %32 = vector.extract_strided_slice %7 {offsets = [0, 0, 2, 0], sizes = [2, 8, 8, 32], strides = [1, 1, 1, 1]} : vector<2x10x10x32xbf16> to vector<2x8x8x32xbf16>
    %33 = vector.shape_cast %32 : vector<2x8x8x32xbf16> to vector<128x32xbf16>
    %34 = vector.extract_strided_slice %8 {offsets = [2, 0, 0], sizes = [1, 32, 32], strides = [1, 1, 1]} : vector<9x32x32xbf16> to vector<1x32x32xbf16>
    %35 = vector.shape_cast %34 : vector<1x32x32xbf16> to vector<32x32xbf16>
    %cst_21 = arith.constant dense<0.000000e+00> : vector<128x32xf32>
    %36 = tpu.matmul %33, %35, %cst_21 {dimension_numbers = #tpu.dot_dimension_numbers<[1], [0], [0], [1], [0, 0, 1, 1], [], []>} : vector<128x32xbf16>, vector<32x32xbf16>, vector<128x32xf32> -> vector<128x32xf32>
    %37 = arith.addf %27, %36 : vector<128x32xf32>
    %38 = vector.extract_strided_slice %9 {offsets = [2, 0, 0], sizes = [1, 32, 32], strides = [1, 1, 1]} : vector<9x32x32xbf16> to vector<1x32x32xbf16>
    %39 = vector.shape_cast %38 : vector<1x32x32xbf16> to vector<32x32xbf16>
    %cst_22 = arith.constant dense<0.000000e+00> : vector<128x32xf32>
    %40 = tpu.matmul %33, %39, %cst_22 {dimension_numbers = #tpu.dot_dimension_numbers<[1], [0], [0], [1], [0, 0, 1, 1], [], []>} : vector<128x32xbf16>, vector<32x32xbf16>, vector<128x32xf32> -> vector<128x32xf32>
    %41 = arith.addf %31, %40 : vector<128x32xf32>
    %42 = vector.extract_strided_slice %7 {offsets = [0, 1, 0, 0], sizes = [2, 8, 8, 32], strides = [1, 1, 1, 1]} : vector<2x10x10x32xbf16> to vector<2x8x8x32xbf16>
    %43 = vector.shape_cast %42 : vector<2x8x8x32xbf16> to vector<128x32xbf16>
    %44 = vector.extract_strided_slice %8 {offsets = [3, 0, 0], sizes = [1, 32, 32], strides = [1, 1, 1]} : vector<9x32x32xbf16> to vector<1x32x32xbf16>
    %45 = vector.shape_cast %44 : vector<1x32x32xbf16> to vector<32x32xbf16>
    %cst_23 = arith.constant dense<0.000000e+00> : vector<128x32xf32>
    %46 = tpu.matmul %43, %45, %cst_23 {dimension_numbers = #tpu.dot_dimension_numbers<[1], [0], [0], [1], [0, 0, 1, 1], [], []>} : vector<128x32xbf16>, vector<32x32xbf16>, vector<128x32xf32> -> vector<128x32xf32>
    %47 = arith.addf %37, %46 : vector<128x32xf32>
    %48 = vector.extract_strided_slice %9 {offsets = [3, 0, 0], sizes = [1, 32, 32], strides = [1, 1, 1]} : vector<9x32x32xbf16> to vector<1x32x32xbf16>
    %49 = vector.shape_cast %48 : vector<1x32x32xbf16> to vector<32x32xbf16>
    %cst_24 = arith.constant dense<0.000000e+00> : vector<128x32xf32>
    %50 = tpu.matmul %43, %49, %cst_24 {dimension_numbers = #tpu.dot_dimension_numbers<[1], [0], [0], [1], [0, 0, 1, 1], [], []>} : vector<128x32xbf16>, vector<32x32xbf16>, vector<128x32xf32> -> vector<128x32xf32>
    %51 = arith.addf %41, %50 : vector<128x32xf32>
    %52 = vector.extract_strided_slice %7 {offsets = [0, 1, 1, 0], sizes = [2, 8, 8, 32], strides = [1, 1, 1, 1]} : vector<2x10x10x32xbf16> to vector<2x8x8x32xbf16>
    %53 = vector.shape_cast %52 : vector<2x8x8x32xbf16> to vector<128x32xbf16>
    %54 = vector.extract_strided_slice %8 {offsets = [4, 0, 0], sizes = [1, 32, 32], strides = [1, 1, 1]} : vector<9x32x32xbf16> to vector<1x32x32xbf16>
    %55 = vector.shape_cast %54 : vector<1x32x32xbf16> to vector<32x32xbf16>
    %cst_25 = arith.constant dense<0.000000e+00> : vector<128x32xf32>
    %56 = tpu.matmul %53, %55, %cst_25 {dimension_numbers = #tpu.dot_dimension_numbers<[1], [0], [0], [1], [0, 0, 1, 1], [], []>} : vector<128x32xbf16>, vector<32x32xbf16>, vector<128x32xf32> -> vector<128x32xf32>
    %57 = arith.addf %47, %56 : vector<128x32xf32>
    %58 = vector.extract_strided_slice %9 {offsets = [4, 0, 0], sizes = [1, 32, 32], strides = [1, 1, 1]} : vector<9x32x32xbf16> to vector<1x32x32xbf16>
    %59 = vector.shape_cast %58 : vector<1x32x32xbf16> to vector<32x32xbf16>
    %cst_26 = arith.constant dense<0.000000e+00> : vector<128x32xf32>
    %60 = tpu.matmul %53, %59, %cst_26 {dimension_numbers = #tpu.dot_dimension_numbers<[1], [0], [0], [1], [0, 0, 1, 1], [], []>} : vector<128x32xbf16>, vector<32x32xbf16>, vector<128x32xf32> -> vector<128x32xf32>
    %61 = arith.addf %51, %60 : vector<128x32xf32>
    %62 = vector.extract_strided_slice %7 {offsets = [0, 1, 2, 0], sizes = [2, 8, 8, 32], strides = [1, 1, 1, 1]} : vector<2x10x10x32xbf16> to vector<2x8x8x32xbf16>
    %63 = vector.shape_cast %62 : vector<2x8x8x32xbf16> to vector<128x32xbf16>
    %64 = vector.extract_strided_slice %8 {offsets = [5, 0, 0], sizes = [1, 32, 32], strides = [1, 1, 1]} : vector<9x32x32xbf16> to vector<1x32x32xbf16>
    %65 = vector.shape_cast %64 : vector<1x32x32xbf16> to vector<32x32xbf16>
    %cst_27 = arith.constant dense<0.000000e+00> : vector<128x32xf32>
    %66 = tpu.matmul %63, %65, %cst_27 {dimension_numbers = #tpu.dot_dimension_numbers<[1], [0], [0], [1], [0, 0, 1, 1], [], []>} : vector<128x32xbf16>, vector<32x32xbf16>, vector<128x32xf32> -> vector<128x32xf32>
    %67 = arith.addf %57, %66 : vector<128x32xf32>
    %68 = vector.extract_strided_slice %9 {offsets = [5, 0, 0], sizes = [1, 32, 32], strides = [1, 1, 1]} : vector<9x32x32xbf16> to vector<1x32x32xbf16>
    %69 = vector.shape_cast %68 : vector<1x32x32xbf16> to vector<32x32xbf16>
    %cst_28 = arith.constant dense<0.000000e+00> : vector<128x32xf32>
    %70 = tpu.matmul %63, %69, %cst_28 {dimension_numbers = #tpu.dot_dimension_numbers<[1], [0], [0], [1], [0, 0, 1, 1], [], []>} : vector<128x32xbf16>, vector<32x32xbf16>, vector<128x32xf32> -> vector<128x32xf32>
    %71 = arith.addf %61, %70 : vector<128x32xf32>
    %72 = vector.extract_strided_slice %7 {offsets = [0, 2, 0, 0], sizes = [2, 8, 8, 32], strides = [1, 1, 1, 1]} : vector<2x10x10x32xbf16> to vector<2x8x8x32xbf16>
    %73 = vector.shape_cast %72 : vector<2x8x8x32xbf16> to vector<128x32xbf16>
    %74 = vector.extract_strided_slice %8 {offsets = [6, 0, 0], sizes = [1, 32, 32], strides = [1, 1, 1]} : vector<9x32x32xbf16> to vector<1x32x32xbf16>
    %75 = vector.shape_cast %74 : vector<1x32x32xbf16> to vector<32x32xbf16>
    %cst_29 = arith.constant dense<0.000000e+00> : vector<128x32xf32>
    %76 = tpu.matmul %73, %75, %cst_29 {dimension_numbers = #tpu.dot_dimension_numbers<[1], [0], [0], [1], [0, 0, 1, 1], [], []>} : vector<128x32xbf16>, vector<32x32xbf16>, vector<128x32xf32> -> vector<128x32xf32>
    %77 = arith.addf %67, %76 : vector<128x32xf32>
    %78 = vector.extract_strided_slice %9 {offsets = [6, 0, 0], sizes = [1, 32, 32], strides = [1, 1, 1]} : vector<9x32x32xbf16> to vector<1x32x32xbf16>
    %79 = vector.shape_cast %78 : vector<1x32x32xbf16> to vector<32x32xbf16>
    %cst_30 = arith.constant dense<0.000000e+00> : vector<128x32xf32>
    %80 = tpu.matmul %73, %79, %cst_30 {dimension_numbers = #tpu.dot_dimension_numbers<[1], [0], [0], [1], [0, 0, 1, 1], [], []>} : vector<128x32xbf16>, vector<32x32xbf16>, vector<128x32xf32> -> vector<128x32xf32>
    %81 = arith.addf %71, %80 : vector<128x32xf32>
    %82 = vector.extract_strided_slice %7 {offsets = [0, 2, 1, 0], sizes = [2, 8, 8, 32], strides = [1, 1, 1, 1]} : vector<2x10x10x32xbf16> to vector<2x8x8x32xbf16>
    %83 = vector.shape_cast %82 : vector<2x8x8x32xbf16> to vector<128x32xbf16>
    %84 = vector.extract_strided_slice %8 {offsets = [7, 0, 0], sizes = [1, 32, 32], strides = [1, 1, 1]} : vector<9x32x32xbf16> to vector<1x32x32xbf16>
    %85 = vector.shape_cast %84 : vector<1x32x32xbf16> to vector<32x32xbf16>
    %cst_31 = arith.constant dense<0.000000e+00> : vector<128x32xf32>
    %86 = tpu.matmul %83, %85, %cst_31 {dimension_numbers = #tpu.dot_dimension_numbers<[1], [0], [0], [1], [0, 0, 1, 1], [], []>} : vector<128x32xbf16>, vector<32x32xbf16>, vector<128x32xf32> -> vector<128x32xf32>
    %87 = arith.addf %77, %86 : vector<128x32xf32>
    %88 = vector.extract_strided_slice %9 {offsets = [7, 0, 0], sizes = [1, 32, 32], strides = [1, 1, 1]} : vector<9x32x32xbf16> to vector<1x32x32xbf16>
    %89 = vector.shape_cast %88 : vector<1x32x32xbf16> to vector<32x32xbf16>
    %cst_32 = arith.constant dense<0.000000e+00> : vector<128x32xf32>
    %90 = tpu.matmul %83, %89, %cst_32 {dimension_numbers = #tpu.dot_dimension_numbers<[1], [0], [0], [1], [0, 0, 1, 1], [], []>} : vector<128x32xbf16>, vector<32x32xbf16>, vector<128x32xf32> -> vector<128x32xf32>
    %91 = arith.addf %81, %90 : vector<128x32xf32>
    %92 = vector.extract_strided_slice %7 {offsets = [0, 2, 2, 0], sizes = [2, 8, 8, 32], strides = [1, 1, 1, 1]} : vector<2x10x10x32xbf16> to vector<2x8x8x32xbf16>
    %93 = vector.shape_cast %92 : vector<2x8x8x32xbf16> to vector<128x32xbf16>
    %94 = vector.extract_strided_slice %8 {offsets = [8, 0, 0], sizes = [1, 32, 32], strides = [1, 1, 1]} : vector<9x32x32xbf16> to vector<1x32x32xbf16>
    %95 = vector.shape_cast %94 : vector<1x32x32xbf16> to vector<32x32xbf16>
    %cst_33 = arith.constant dense<0.000000e+00> : vector<128x32xf32>
    %96 = tpu.matmul %93, %95, %cst_33 {dimension_numbers = #tpu.dot_dimension_numbers<[1], [0], [0], [1], [0, 0, 1, 1], [], []>} : vector<128x32xbf16>, vector<32x32xbf16>, vector<128x32xf32> -> vector<128x32xf32>
    %97 = arith.addf %87, %96 : vector<128x32xf32>
    %98 = vector.extract_strided_slice %9 {offsets = [8, 0, 0], sizes = [1, 32, 32], strides = [1, 1, 1]} : vector<9x32x32xbf16> to vector<1x32x32xbf16>
    %99 = vector.shape_cast %98 : vector<1x32x32xbf16> to vector<32x32xbf16>
    %cst_34 = arith.constant dense<0.000000e+00> : vector<128x32xf32>
    %100 = tpu.matmul %93, %99, %cst_34 {dimension_numbers = #tpu.dot_dimension_numbers<[1], [0], [0], [1], [0, 0, 1, 1], [], []>} : vector<128x32xbf16>, vector<32x32xbf16>, vector<128x32xf32> -> vector<128x32xf32>
    %101 = arith.addf %91, %100 : vector<128x32xf32>
    %c0_35 = arith.constant 0 : index
    %c0_36 = arith.constant 0 : index
    %102 = vector.load %arg4[%c0_35, %c0_36] : memref<1x32xf32, #tpu.memory_space<vmem>>, vector<1x32xf32>
    %103 = vector.broadcast %102 : vector<1x32xf32> to vector<128x32xf32>
    %104 = arith.addf %97, %103 : vector<128x32xf32>
    %c0_37 = arith.constant 0 : index
    %c0_38 = arith.constant 0 : index
    %105 = vector.load %arg5[%c0_37, %c0_38] : memref<1x32xf32, #tpu.memory_space<vmem>>, vector<1x32xf32>
    %106 = vector.broadcast %105 : vector<1x32xf32> to vector<128x32xf32>
    %107 = arith.addf %101, %106 : vector<128x32xf32>
    %cst_39 = arith.constant 0.00999999977 : f32
    %108 = vector.broadcast %cst_39 : f32 to vector<128x32xf32>
    %109 = arith.mulf %108, %104 : vector<128x32xf32>
    %110 = arith.maximumf %104, %109 : vector<128x32xf32>
    %cst_40 = arith.constant 0.00999999977 : f32
    %111 = vector.broadcast %cst_40 : f32 to vector<128x32xf32>
    %112 = arith.mulf %111, %107 : vector<128x32xf32>
    %113 = arith.maximumf %107, %112 : vector<128x32xf32>
    %114 = arith.negf %113 : vector<128x32xf32>
    %115 = math.exp %114 : vector<128x32xf32>
    %cst_41 = arith.constant 1.000000e+00 : f32
    %116 = vector.broadcast %cst_41 : f32 to vector<128x32xf32>
    %117 = arith.addf %116, %115 : vector<128x32xf32>
    %118 = arith.divf %116, %117 : vector<128x32xf32>
    %119 = arith.mulf %110, %118 : vector<128x32xf32>
    %120 = vector.shape_cast %119 : vector<128x32xf32> to vector<2x64x32xf32>
    %c0_42 = arith.constant 0 : index
    %c0_43 = arith.constant 0 : index
    %c0_44 = arith.constant 0 : index
    %121 = vector.load %arg6[%c0_42, %c0_43, %c0_44] : memref<2x64x32xf32, #tpu.memory_space<vmem>>, vector<2x64x32xf32>
    tpu.vector_store %arg6[%c0_42, %c0_43, %c0_44], %120 {strides = array<i32>} : memref<2x64x32xf32, #tpu.memory_space<vmem>>, vector<2x64x32xf32>,
    return
  }
  func.func @transform_0(%arg0: i32) -> (i32, i32, i32) {
    %c0_i32 = arith.constant 0 : i32
    %c0_i32_0 = arith.constant 0 : i32
    %c0_i32_1 = arith.constant 0 : i32
    return %arg0, %c0_i32, %c0_i32_0 : i32, i32, i32
  }
  func.func @transform_1(%arg0: i32) -> (i32, i32, i32) {
    %c0_i32 = arith.constant 0 : i32
    %c0_i32_0 = arith.constant 0 : i32
    %c0_i32_1 = arith.constant 0 : i32
    %c0_i32_2 = arith.constant 0 : i32
    return %c0_i32, %c0_i32_0, %c0_i32_1 : i32, i32, i32
  }
  func.func @transform_2(%arg0: i32) -> (i32, i32, i32) {
    %c0_i32 = arith.constant 0 : i32
    %c0_i32_0 = arith.constant 0 : i32
    %c0_i32_1 = arith.constant 0 : i32
    %c0_i32_2 = arith.constant 0 : i32
    return %c0_i32, %c0_i32_0, %c0_i32_1 : i32, i32, i32
  }
  func.func @transform_3(%arg0: i32) -> (i32, i32) {
    %c0_i32 = arith.constant 0 : i32
    %c0_i32_0 = arith.constant 0 : i32
    %c0_i32_1 = arith.constant 0 : i32
    return %c0_i32, %c0_i32_0 : i32, i32
  }
  func.func @transform_4(%arg0: i32) -> (i32, i32) {
    %c0_i32 = arith.constant 0 : i32
    %c0_i32_0 = arith.constant 0 : i32
    %c0_i32_1 = arith.constant 0 : i32
    return %c0_i32, %c0_i32_0 : i32, i32
  }
  func.func @transform_5(%arg0: i32) -> (i32, i32, i32) {
    %c0_i32 = arith.constant 0 : i32
    %c0_i32_0 = arith.constant 0 : i32
    %c0_i32_1 = arith.constant 0 : i32
    return %arg0, %c0_i32, %c0_i32_0 : i32, i32, i32
  }
}

</mosaic_0001>

<bundles_post_ra>
// kernel: tpu_custom_call.1
= control target key start
LH: loop header
LB: loop body
LE: loop exit
PB: predicated region body
PF: predicated region fallthrough
CT: control target
= control target key end

     0   :  { %10 = vsyncpa [#allocation4], 0  ;;  %s4865_s18 = smov [#allocation3]   ;;  %s6109_s0 = inlined_call_operand.vmem [shape: f32[2,64,32], index: 0, kind: input, shape index: {}]   ;;  %s6110_s1 = inlined_call_operand.vmem [shape: bf16[9,32,32], index: 1, kind: input, shape index: {}]   ;;  %s6111_s2 = inlined_call_operand.hbm [shape: bf16[9,32,32], index: 2, kind: input, shape index: {}]   ;;  %s6112_s3 = inlined_call_operand.vmem [shape: f32[1,32], index: 3, kind: input, shape index: {}]   ;;  %s6113_s4 = inlined_call_operand.vmem [shape: f32[1,32], index: 4, kind: input, shape index: {}]   ;;  %s6114_s5 = inlined_call_operand.vmem [shape: f32[2,64,32], index: 5, kind: output, shape index: {}]  }
   0x1   :  { %s20_s19 = sshll.u32 %s4865_s18, 4  ;;  %s4841_s22 = scalar_lea.hbm %s6111_s2, 2304  ;;  %s21_s19 = int_to_ptr.vmem [resolvable:$true] %s20_s19 }
   0x2   :  { %p4842_p0 = scmp.ne.s32.totalorder %s6111_s2, %s4841_s22  ;;  %p4845_p1 = scmp.lt.u32.totalorder %s4841_s22, %s6111_s2 }
   0x4   :  { %p4847_p2 = pnand %p4845_p1, %p4842_p0 }
   0x6   :  { %4850 = shalt.err (!%p4847_p2)
}
   0x7   :  { %s4851_s27 = scalar_lea.vmem %s21_s19, 2304  ;;  %p4856_p4 = scmp.lt.s32.totalorder %s21_s19, %s21_s19 }
   0x8   :  { %p4852_p3 = scmp.ne.s32.totalorder %s21_s19, %s4851_s27  ;;  %p4857_p5 = scmp.lt.s32.totalorder %s4851_s27, %s4851_s27 }
   0xa   :  { %p4858_p6 = por %p4857_p5, %p4856_p4 }
   0xc   :  { %p4859_p7 = pnand %p4858_p6, %p4852_p3 }
   0xe   :  { %4862 = shalt.err (!%p4859_p7)
}
   0xf   :  { %s4866_s28 = smov 64   ;;  %s4867_s29 = smov 4  }
  0x10   :  { %26 = dma.hbm_to_vmem [thread:$0]  %s6111_s2, 2304, %s21_s19, [#allocation4], %s4866_s28, %s4866_s28, %s4867_s29  }
  0x11   :  { %4863 = dma.done.wait [#allocation4], 2304  }
  0x12   :  { %4864 = vsyncadd [#allocation4], 4294964992  ;;  %vm39_vm0 = vcmask 257024   ;;  %vm41_vm1 = vcmask 253952   ;;  %v4868_v0 = vmov 0   ;;  %v4736_v1 = vld [vmem:[#allocation3 + $0x10] sm:$0xff]  }
  0x13   :  { %40 = vst.msk [vmem:[#allocation2] sm:$0xf] %vm39_vm0, %v4868_v0  ;;  %43 = vst.msk [vmem:[#allocation2 + $0x8] sm:$0xf] %vm39_vm0, %v4868_v0  ;;  %v4737_v2 = vld [vmem:[%s6110_s1 + $0x10] sm:$0xff]   ;;  %4156 = vmatprep.subr.bf16.mxu1 %v4736_v1  ;;  %v4738_v3 = vld [vmem:[#allocation3 + $0x18] sm:$0xff]  }
  0x14   :  { %42 = vst.msk [vmem:[#allocation2 + $0x4] sm:$0x1] %vm41_vm1, %v4868_v0  ;;  %44 = vst.msk [vmem:[#allocation2 + $0xc] sm:$0x1] %vm41_vm1, %v4868_v0  ;;  %4116 = vmatprep.subr.bf16.mxu0 %v4737_v2  ;;  %4157 = vmatpush3.bf16.msra.mxu1 %v4736_v1  ;;  %v4739_v4 = vld [vmem:[%s6110_s1 + $0x18] sm:$0xff]   ;;  %v81_v5 = vld [vmem:[%s6109_s0] sm:$0xff] }
  0x15   :  { %45 = vst.msk [vmem:[#allocation2 + $0x10] sm:$0xf] %vm39_vm0, %v4868_v0  ;;  %47 = vst.msk [vmem:[#allocation2 + $0x18] sm:$0xf] %vm39_vm0, %v4868_v0  ;;  %4117 = vmatpush3.bf16.msra.mxu0 %v4737_v2  ;;  %4158 = vmatprep.subr.bf16.mxu1 %v4738_v3  ;;  %v82_v6 = vld [vmem:[%s6109_s0 + $0x8] sm:$0xff]  ;;  %v83_v7 = vld [vmem:[%s6109_s0 + $0x10] sm:$0xff]  ;;  %v3920_v9 = vpack.c.bf16 %v81_v5, %v81_v5 }
  0x16   :  { %46 = vst.msk [vmem:[#allocation2 + $0x14] sm:$0x1] %vm41_vm1, %v4868_v0  ;;  %48 = vst.msk [vmem:[#allocation2 + $0x1c] sm:$0x1] %vm41_vm1, %v4868_v0  ;;  %4118 = vmatprep.subr.bf16.mxu0 %v4739_v4  ;;  %v84_v8 = vld [vmem:[%s6109_s0 + $0x18] sm:$0xff]  ;;  %v3921_v10 = vpack.c.bf16 %v82_v6, %v82_v6  ;;  %v3922_v11 = vpack.c.bf16 %v83_v7, %v83_v7  ;;  %vm1312_vm4 = vcmask 1042432  }
  0x17   :  { %49 = vst.msk [vmem:[#allocation2 + $0x20] sm:$0xf] %vm39_vm0, %v4868_v0  ;;  %51 = vst.msk [vmem:[#allocation2 + $0x28] sm:$0xf] %vm39_vm0, %v4868_v0  ;;  %v3923_v12 = vpack.c.bf16 %v84_v8, %v84_v8  ;;  %vm307_vm2 = vsmask.f32 7938 }
  0x18   :  { %50 = vst.msk [vmem:[#allocation2 + $0x24] sm:$0x1] %vm41_vm1, %v4868_v0  ;;  %52 = vst.msk [vmem:[#allocation2 + $0x2c] sm:$0x1] %vm41_vm1, %v4868_v0  ;;  %vm313_vm3 = vsmask.f32 256  ;;  %4159 = vmatpush3.bf16.msra.mxu1 %v4738_v3 }
  0x19   :  { %53 = vst.msk [vmem:[#allocation2 + $0x30] sm:$0xf] %vm39_vm0, %v4868_v0  ;;  %55 = vst.msk [vmem:[#allocation2 + $0x38] sm:$0xf] %vm39_vm0, %v4868_v0  ;;  %v146_v13 = vshrl.u32 %v3920_v9, 16  ;;  %v149_v14 = vshll.u32 %v3920_v9, 16  ;;  %4119 = vmatpush3.bf16.msra.mxu0 %v4739_v4 }
  0x1a   :  { %54 = vst.msk [vmem:[#allocation2 + $0x34] sm:$0x1] %vm41_vm1, %v4868_v0  ;;  %56 = vst.msk [vmem:[#allocation2 + $0x3c] sm:$0x1] %vm41_vm1, %v4868_v0  ;;  %v154_v15 = vshrl.u32 %v3921_v10, 16  ;;  %v157_v16 = vshll.u32 %v3921_v10, 16 }
  0x1b   :  { %57 = vst.msk [vmem:[#allocation2 + $0x40] sm:$0xf] %vm39_vm0, %v4868_v0  ;;  %59 = vst.msk [vmem:[#allocation2 + $0x48] sm:$0xf] %vm39_vm0, %v4868_v0  ;;  %v162_v17 = vshrl.u32 %v3922_v11, 16  ;;  %v165_v18 = vshll.u32 %v3922_v11, 16 }
  0x1c   :  { %58 = vst.msk [vmem:[#allocation2 + $0x44] sm:$0x1] %vm41_vm1, %v4868_v0  ;;  %60 = vst.msk [vmem:[#allocation2 + $0x4c] sm:$0x1] %vm41_vm1, %v4868_v0  ;;  %v170_v19 = vshrl.u32 %v3923_v12, 16  ;;  %v173_v20 = vshll.u32 %v3923_v12, 16 }
  0x1d   :  { %61 = vst.msk [vmem:[#allocation2 + $0x50] sm:$0xf] %vm39_vm0, %v4868_v0  ;;  %63 = vst.msk [vmem:[#allocation2 + $0x58] sm:$0xf] %vm39_vm0, %v4868_v0  ;;  %v309_v21 = vld [vmem:[#allocation2 + $0x8] sm:$0xf] }
  0x1e   :  { %62 = vst.msk [vmem:[#allocation2 + $0x54] sm:$0x1] %vm41_vm1, %v4868_v0  ;;  %64 = vst.msk [vmem:[#allocation2 + $0x5c] sm:$0x1] %vm41_vm1, %v4868_v0  ;;  %v315_v22 = vld [vmem:[#allocation2 + $0xc] sm:$0x1] }
  0x1f   :  { %65 = vst.msk [vmem:[#allocation2 + $0x60] sm:$0xf] %vm39_vm0, %v4868_v0  ;;  %67 = vst.msk [vmem:[#allocation2 + $0x68] sm:$0xf] %vm39_vm0, %v4868_v0  ;;  %v318_v23 = vld [vmem:[#allocation2 + $0x10] sm:$0xf] }
  0x20   :  { %66 = vst.msk [vmem:[#allocation2 + $0x64] sm:$0x1] %vm41_vm1, %v4868_v0  ;;  %68 = vst.msk [vmem:[#allocation2 + $0x6c] sm:$0x1] %vm41_vm1, %v4868_v0  ;;  %v321_v24 = vld [vmem:[#allocation2 + $0x14] sm:$0x1] }
  0x21   :  { %69 = vst.msk [vmem:[#allocation2 + $0x70] sm:$0xf] %vm39_vm0, %v4868_v0  ;;  %71 = vst.msk [vmem:[#allocation2 + $0x78] sm:$0xf] %vm39_vm0, %v4868_v0  ;;  %vm520_vm5 = vsmask.f32 3328 }
  0x22   :  { %70 = vst.msk [vmem:[#allocation2 + $0x74] sm:$0x1] %vm41_vm1, %v4868_v0  ;;  %72 = vst.msk [vmem:[#allocation2 + $0x7c] sm:$0x1] %vm41_vm1, %v4868_v0  ;;  %vm521_vm6 = vsmask.f32 7440 }
  0x23   :  { %73 = vst.msk [vmem:[#allocation2 + $0x80] sm:$0xf] %vm39_vm0, %v4868_v0  ;;  %75 = vst.msk [vmem:[#allocation2 + $0x88] sm:$0xf] %vm39_vm0, %v4868_v0  ;;  %v148_v25 = vrot.slane %v146_v13, 7  ;;  %v156_v26 = vrot.slane %v154_v15, 7 }
  0x24   :  { %74 = vst.msk [vmem:[#allocation2 + $0x84] sm:$0x1] %vm41_vm1, %v4868_v0  ;;  %76 = vst.msk [vmem:[#allocation2 + $0x8c] sm:$0x1] %vm41_vm1, %v4868_v0  ;;  %v324_v28 = vld [vmem:[#allocation2 + $0x18] sm:$0xf] }
  0x25   :  { %77 = vst.msk [vmem:[#allocation2 + $0x90] sm:$0xf] %vm39_vm0, %v4868_v0  ;;  %79 = vst.msk [vmem:[#allocation2 + $0x98] sm:$0xf] %vm39_vm0, %v4868_v0  ;;  %v327_v29 = vld [vmem:[#allocation2 + $0x1c] sm:$0x1]  ;;  %v151_v38 = vor.u32 %v149_v14, %v148_v25  ;;  %v159_v40 = vor.u32 %v157_v16, %v156_v26 }
  0x26   :  { %78 = vst.msk [vmem:[#allocation2 + $0x94] sm:$0x1] %vm41_vm1, %v4868_v0  ;;  %80 = vst.msk [vmem:[#allocation2 + $0x9c] sm:$0x1] %vm41_vm1, %v4868_v0  ;;  %v330_v30 = vld [vmem:[#allocation2 + $0x20] sm:$0xf] }
  0x27   :  { %vm4971_vm7 = vmand %vm39_vm0, %vm307_vm2  ;;  %v4975_v31 = vld [vmem:[#allocation2] sm:$0xf]  ;;  %v164_v32 = vrot.slane %v162_v17, 7  ;;  %v172_v33 = vrot.slane %v170_v19, 7  ;;  %v333_v35 = vld [vmem:[#allocation2 + $0x24] sm:$0x1] }
  0x28   :  { %vm4979_vm8 = vmand %vm41_vm1, %vm313_vm3  ;;  %v524_v36 = vshrl.u32 %v4975_v31, 16  ;;  %v527_v37 = vshll.u32 %v4975_v31, 16  ;;  %v152_v39 = vrot.slane %v148_v25, 4  ;;  %v160_v41 = vrot.slane %v156_v26, 4  ;;  %v409_v46 = vld [vmem:[#allocation2 + $0x4] sm:$0x1] }
  0x29   :  { %v167_v42 = vor.u32 %v165_v18, %v164_v32  ;;  %v168_v43 = vrot.slane %v164_v32, 4  ;;  %v175_v44 = vor.u32 %v173_v20, %v172_v33  ;;  %v176_v45 = vrot.slane %v172_v33, 4  ;;  %v4985_v47 = vld [vmem:[#allocation3] sm:$0xff]   ;;  %v85_v52 = vld [vmem:[%s6109_s0 + $0x20] sm:$0xff]  ;;  %v86_v53 = vld [vmem:[%s6109_s0 + $0x28] sm:$0xff] }
  0x2a   :  { %v310_v48 = vsel %vm4971_vm7, %v151_v38, %v309_v21  ;;  %v316_v49 = vsel %vm4979_vm8, %v152_v39, %v315_v22  ;;  %v319_v50 = vsel %vm4971_vm7, %v159_v40, %v318_v23  ;;  %v322_v51 = vsel %vm4979_vm8, %v160_v41, %v321_v24  ;;  %v87_v54 = vld [vmem:[%s6109_s0 + $0x30] sm:$0xff]  ;;  %4176 = vmatprep.subr.bf16.mxu1 %v4985_v47  ;;  %v89_v2 = vld [vmem:[%s6109_s0 + $0x40] sm:$0xff]  ;;  %vm5036_vm11 = vmor %vm520_vm5, %vm521_vm6 }
  0x2b   :  { %311 = vst [vmem:[#allocation2 + $0x8] sm:$0xf] %v310_v48  ;;  %317 = vst [vmem:[#allocation2 + $0xc] sm:$0x1] %v316_v49  ;;  %v325_v55 = vsel %vm4971_vm7, %v167_v42, %v324_v28  ;;  %v328_v56 = vsel %vm4979_vm8, %v168_v43, %v327_v29  ;;  %v331_v57 = vsel %vm4971_vm7, %v175_v44, %v330_v30  ;;  %v526_v59 = vrot.slane %v524_v36, 4  ;;  %v90_v22 = vld [vmem:[%s6109_s0 + $0x48] sm:$0xff] }
  0x2c   :  { %320 = vst [vmem:[#allocation2 + $0x10] sm:$0xf] %v319_v50  ;;  %323 = vst [vmem:[#allocation2 + $0x14] sm:$0x1] %v322_v51  ;;  %v334_v58 = vsel %vm4979_vm8, %v176_v45, %v333_v35  ;;  %v529_v60 = vrot.slane %v527_v37, 5  ;;  %v533_v61 = vshll.u32 %v409_v46, 16  ;;  %v3924_v63 = vpack.c.bf16 %v85_v52, %v85_v52 }
  0x2d   :  { %326 = vst [vmem:[#allocation2 + $0x18] sm:$0xf] %v325_v55  ;;  %329 = vst [vmem:[#allocation2 + $0x1c] sm:$0x1] %v328_v56  ;;  %vm1313_vm9 = vcmask 1046532   ;;  %v1317_v62 = vrot.slane %v409_v46, 5  ;;  %v5013_v0 = vpack.c.bf16 %v86_v53, %v86_v53  ;;  %v5015_v1 = vpack.c.bf16 %v87_v54, %v87_v54 }
  0x2e   :  { %332 = vst [vmem:[#allocation2 + $0x20] sm:$0xf] %v331_v57  ;;  %335 = vst [vmem:[#allocation2 + $0x24] sm:$0x1] %v334_v58  ;;  %v530_v3 = vor.u32 %v529_v60, %v526_v59  ;;  %v5020_v4 = vrot.slane %v533_v61, 5  ;;  %v5022_v5 = vpack.c.bf16 %v89_v2, %v89_v2  ;;  %v3704_v7 = vrot.slane %v4975_v31, 9 }
  0x2f   :  { %v5024_v6 = vld [vmem:[#allocation2 + $0x50] sm:$0xf]  ;;  %vm5028_vm10 = vmor %vm1312_vm4, %vm1313_vm9  ;;  %v178_v9 = vshrl.u32 %v3924_v63, 16  ;;  %v181_v10 = vshll.u32 %v3924_v63, 16  ;;  %v186_v11 = vshrl.u32 %v5013_v0, 16  ;;  %v189_v12 = vshll.u32 %v5013_v0, 16 }
  0x30   :  { %v5040_v14 = vrot.slane %v530_v3, 4  ;;  %v194_v15 = vshrl.u32 %v5015_v1, 16  ;;  %v197_v16 = vshll.u32 %v5015_v1, 16  ;;  %v210_v17 = vshrl.u32 %v5022_v5, 16  ;;  %v91_v23 = vld [vmem:[%s6109_s0 + $0x50] sm:$0xff] }
  0x31   :  { %v5045_v18 = vrot.slane %v178_v9, 7  ;;  %v5047_v19 = vrot.slane %v186_v11, 7  ;;  %v213_v20 = vshll.u32 %v5022_v5, 16  ;;  %v636_v21 = vshrl.u32 %v5024_v6, 16  ;;  %v4755_v27 = vld [vmem:[%s6110_s1 + $0x30] sm:$0xff]  }
  0x32   :  { %v5057_v24 = vld [vmem:[#allocation2 + $0x8] sm:$0xf]  ;;  %v5059_v25 = vld [vmem:[#allocation2 + $0xc] sm:$0x1]  ;;  %v5065_v28 = vsel %vm5028_vm10, %v3704_v7, %v1317_v62  ;;  %v536_v32 = vsel %vm5036_vm11, %v5040_v14, %v5020_v4  ;;  %v5073_v33 = vpack.c.bf16 %v90_v22, %v90_v22  ;;  %v5075_v35 = vpack.c.bf16 %v91_v23, %v91_v23 }
  0x33   :  { %v5061_v26 = vld [vmem:[#allocation2 + $0x10] sm:$0xf]  ;;  %v413_v29 = vld [vmem:[#allocation2 + $0x14] sm:$0x1]  ;;  %v5079_v36 = vcombine.low %v4975_v31, %v5057_v24  ;;  %v538_v38 = vshrl.u32 %v5057_v24, 16  ;;  %v541_v39 = vshll.u32 %v5057_v24, 16  ;;  %v183_v40 = vor.u32 %v181_v10, %v5045_v18 }
  0x34   :  { %v5067_v30 = vld [vmem:[#allocation2 + $0x18] sm:$0xf]  ;;  %v5081_v37 = vld [vmem:[#allocation2 + $0x1c] sm:$0x1]  ;;  %vm783_vm12 = vcmask 261120   ;;  %v547_v43 = vshll.u32 %v5059_v25, 16  ;;  %v191_v4 = vor.u32 %v189_v12, %v5047_v19 }
  0x35   :  { %v5088_v41 = vcombine.low %v5061_v26, %v5067_v30  ;;  %v5090_v42 = vld [vmem:[#allocation2 + $0x20] sm:$0xf]  ;;  %v552_v31 = vshrl.u32 %v5061_v26, 16  ;;  %v555_v44 = vshll.u32 %v5061_v26, 16  ;;  %v561_v45 = vshll.u32 %v413_v29, 16 }
  0x36   :  { %v5095_v46 = vld [vmem:[#allocation2 + $0x24] sm:$0x1]  ;;  %v540_v48 = vrot.slane %v538_v38, 4  ;;  %v543_v49 = vrot.slane %v541_v39, 5  ;;  %v566_v50 = vshrl.u32 %v5067_v30, 16  ;;  %v569_v51 = vshll.u32 %v5067_v30, 16 }
  0x37   :  { %v549_v52 = vrot.slane %v547_v43, 5  ;;  %v554_v53 = vrot.slane %v552_v31, 4  ;;  %v557_v54 = vrot.slane %v555_v44, 5  ;;  %v563_v55 = vrot.slane %v561_v45, 5  ;;  %v336_v39 = vld [vmem:[#allocation2 + $0x28] sm:$0xf] }
  0x38   :  { %v544_v56 = vor.u32 %v543_v49, %v540_v48  ;;  %v568_v57 = vrot.slane %v566_v50, 4  ;;  %v571_v58 = vrot.slane %v569_v51, 5  ;;  %v575_v59 = vshll.u32 %v5081_v37, 16  ;;  %v339_v12 = vld [vmem:[#allocation2 + $0x2c] sm:$0x1]  ;;  %v4742_v49 = vld [vmem:[%s6110_s1] sm:$0xff]  }
  0x39   :  { %v558_v60 = vor.u32 %v557_v54, %v554_v53  ;;  %v580_v61 = vshrl.u32 %v5090_v42, 16  ;;  %v583_v62 = vshll.u32 %v5090_v42, 16  ;;  %v589_v63 = vshll.u32 %v5095_v46, 16  ;;  %v342_v48 = vld [vmem:[#allocation2 + $0x30] sm:$0xf]  ;;  %v4741_v53 = vld [vmem:[#allocation3 + $0x8] sm:$0xff]   ;;  %4136 = vmatprep.subr.bf16.mxu0 %v4742_v49 }
  0x3a   :  { %v545_v0 = vrot.slane %v544_v56, 4  ;;  %v572_v2 = vor.u32 %v571_v58, %v568_v57  ;;  %v577_v3 = vrot.slane %v575_v59, 5  ;;  %v3706_v23 = vrot.slane %v5061_v26, 9  ;;  %v4743_v54 = vld [vmem:[%s6110_s1 + $0x8] sm:$0xff]  }
  0x3b   :  { %v559_v7 = vrot.slane %v558_v60, 4  ;;  %v582_v9 = vrot.slane %v580_v61, 4  ;;  %v585_v10 = vrot.slane %v583_v62, 5  ;;  %v591_v11 = vrot.slane %v589_v63, 5  ;;  %v348_v58 = vld [vmem:[#allocation2 + $0x38] sm:$0xf] }
  0x3c   :  { %v550_v14 = vsel %vm5036_vm11, %v545_v0, %v549_v52  ;;  %v573_v22 = vrot.slane %v572_v2, 4  ;;  %v1325_v38 = vrot.slane %v413_v29, 5  ;;  %v3707_v45 = vrot.slane %v5067_v30, 9  ;;  %v351_v59 = vld [vmem:[#allocation2 + $0x3c] sm:$0x1] }
  0x3d   :  { %v564_v43 = vsel %vm5036_vm11, %v559_v7, %v563_v55  ;;  %v586_v31 = vor.u32 %v585_v10, %v582_v9  ;;  %v3648_v44 = vcombine.low %v536_v32, %v550_v14  ;;  %v1329_v51 = vrot.slane %v5081_v37, 5  ;;  %v345_v32 = vld [vmem:[#allocation2 + $0x34] sm:$0x1]  ;;  %v360_v0 = vld [vmem:[#allocation2 + $0x58] sm:$0xf] }
  0x3e   :  { %v578_v50 = vsel %vm5036_vm11, %v573_v22, %v577_v3  ;;  %v5117_v29 = vsel %vm5028_vm10, %v3706_v23, %v1325_v38  ;;  %v5120_v52 = vcombine.low %v550_v14, %v564_v43  ;;  %v184_v57 = vrot.slane %v5045_v18, 4  ;;  %v5132_v60 = vld [vmem:[#allocation2 + $0x54] sm:$0x1]  ;;  %v363_v2 = vld [vmem:[#allocation2 + $0x5c] sm:$0x1]  ;;  %v5176_v14 = vld [vmem:[#allocation3 + $0x20] sm:$0xff]  }
  0x3f   :  { %v587_v55 = vrot.slane %v586_v31, 4  ;;  %v5125_v56 = vcombine.low %v564_v43, %v578_v50  ;;  %4120 = vmatprep.mubr.msk.bf16.mxu0 %vm783_vm12, %v3648_v44  ;;  %4160 = vmatprep.mubr.msk.bf16.mxu1 %vm783_vm12, %v3648_v44  ;;  %v337_v37 = vsel %vm4971_vm7, %v183_v40, %v336_v39  ;;  %v5136_v61 = vsel %vm5028_vm10, %v3707_v45, %v1329_v51  ;;  %v5186_v38 = vld [vmem:[%s6110_s1 + $0x20] sm:$0xff]  }
  0x40   :  { %6141 = vst [vmem:[#allocation6_spill] sm:$0xff] %v5120_v52  ;;  %338 = vst [vmem:[#allocation2 + $0x28] sm:$0xf] %v337_v37  ;;  %v192_v62 = vrot.slane %v5047_v19, 4  ;;  %v196_v63 = vrot.slane %v194_v15, 7  ;;  %v343_v18 = vsel %vm4971_vm7, %v191_v4, %v342_v48  ;;  %v5149_v3 = vcombine.low %v5117_v29, %v5136_v61 }
  0x41   :  { %6142 = vst [vmem:[#allocation7_spill] sm:$0xff] %v5125_v56  ;;  %v5145_v40 = vsel %vm5036_vm11, %v587_v55, %v591_v11  ;;  %4121 = vmatmul.mubr.msk.bf16.vlgmr.msra.gmra.mrb[0].mxu0 %vm783_vm12, %v5125_v56  ;;  %4161 = vmatmul.mubr.msk.bf16.vlgmr.msra.gmra.mrb[0].mxu1 %vm783_vm12, %v5125_v56  ;;  %v340_v15 = vsel %vm4979_vm8, %v184_v57, %v339_v12  ;;  %344 = vst [vmem:[#allocation2 + $0x30] sm:$0xf] %v343_v18  ;;  %v212_v19 = vrot.slane %v210_v17, 7  ;;  %v92_v11 = vld [vmem:[%s6109_s0 + $0x58] sm:$0xff]  ;;  %v93_v17 = vld [vmem:[%s6109_s0 + $0x60] sm:$0xff] }
  0x42   :  { %v5160_v4 = vcombine.low %v578_v50, %v5145_v40  ;;  %4177 = vmatpush3.bf16.msra.mxu1 %v4985_v47  ;;  %341 = vst [vmem:[#allocation2 + $0x2c] sm:$0x1] %v340_v15  ;;  %v199_v7 = vor.u32 %v197_v16, %v196_v63  ;;  %v200_v9 = vrot.slane %v196_v63, 4  ;;  %v346_v10 = vsel %vm4979_vm8, %v192_v62, %v345_v32  ;;  %v94_v47 = vld [vmem:[%s6109_s0 + $0x68] sm:$0xff]  ;;  %v366_v12 = vld [vmem:[#allocation2 + $0x60] sm:$0xf] }
  0x43   :  { %4137 = vmatpush3.bf16.msra.mxu0 %v4742_v49  ;;  %347 = vst [vmem:[#allocation2 + $0x34] sm:$0x1] %v346_v10  ;;  %v215_v1 = vor.u32 %v213_v20, %v212_v19  ;;  %v216_v16 = vrot.slane %v212_v19, 4  ;;  %v638_v22 = vrot.slane %v636_v21, 4  ;;  %v639_v23 = vshll.u32 %v5024_v6, 16  ;;  %4178 = vmatprep.subr.bf16.mxu1 %v4741_v53 }
  0x44   :  { %6143 = vst [vmem:[#allocation8_spill] sm:$0xff] %v5160_v4  ;;  %4138 = vmatprep.subr.bf16.mxu0 %v4743_v54  ;;  %v349_v39 = vsel %vm4971_vm7, %v199_v7, %v348_v58  ;;  %v352_v5 = vsel %vm4979_vm8, %v200_v9, %v351_v59  ;;  %v645_v20 = vshll.u32 %v5132_v60, 16  ;;  %v218_v43 = vshrl.u32 %v5073_v33, 16 }
  0x45   :  { %350 = vst [vmem:[#allocation2 + $0x38] sm:$0xf] %v349_v39  ;;  %353 = vst [vmem:[#allocation2 + $0x3c] sm:$0x1] %v352_v5  ;;  %v361_v21 = vsel %vm4971_vm7, %v215_v1, %v360_v0  ;;  %v364_v31 = vsel %vm4979_vm8, %v216_v16, %v363_v2  ;;  %v641_v44 = vrot.slane %v639_v23, 5  ;;  %v221_v45 = vshll.u32 %v5073_v33, 16 }
  0x46   :  { %362 = vst [vmem:[#allocation2 + $0x58] sm:$0xf] %v361_v21  ;;  %365 = vst [vmem:[#allocation2 + $0x5c] sm:$0x1] %v364_v31  ;;  %v5199_v48 = vrot.slane %v645_v20, 5  ;;  %v5201_v49 = vrot.slane %v218_v43, 7  ;;  %4179 = vmatpush3.bf16.msra.mxu1 %v4741_v53  ;;  %v5207_v57 = vpack.c.bf16 %v92_v11, %v92_v11  ;;  %v5209_v37 = vpack.c.bf16 %v93_v17, %v93_v17 }
  0x47   :  { %v226_v50 = vshrl.u32 %v5075_v35, 16  ;;  %v229_v51 = vshll.u32 %v5075_v35, 16  ;;  %4139 = vmatpush3.bf16.msra.mxu0 %v4743_v54  ;;  %v5205_v32 = vld [vmem:[#allocation2 + $0x28] sm:$0xf]  ;;  %v642_v55 = vor.u32 %v641_v44, %v638_v22  ;;  %v5211_v33 = vpack.c.bf16 %v94_v47, %v94_v47  ;;  %4216 = vmatprep.subr.bf16.mxu1 %v5176_v14 }
  0x48   :  { %v594_v58 = vshrl.u32 %v5205_v32, 16  ;;  %v597_v59 = vshll.u32 %v5205_v32, 16  ;;  %v5216_v62 = vld [vmem:[#allocation2 + $0x30] sm:$0xf]  ;;  %v223_v35 = vor.u32 %v221_v45, %v5201_v49  ;;  %v224_v53 = vrot.slane %v5201_v49, 4  ;;  %4196 = vmatprep.subr.bf16.mxu0 %v5186_v38 }
  0x49   :  { %v5221_v54 = vld [vmem:[#allocation2 + $0x2c] sm:$0x1]  ;;  %v608_v63 = vshrl.u32 %v5216_v62, 16  ;;  %v611_v18 = vshll.u32 %v5216_v62, 16  ;;  %v5225_v0 = vrot.slane %v642_v55, 4  ;;  %v228_v2 = vrot.slane %v226_v50, 7 }
  0x4a   :  { %v596_v15 = vrot.slane %v594_v58, 4  ;;  %v599_v19 = vrot.slane %v597_v59, 5  ;;  %v603_v7 = vshll.u32 %v5221_v54, 16  ;;  %v5228_v9 = vld [vmem:[#allocation2 + $0x34] sm:$0x1]  ;;  %v367_v10 = vsel %vm4971_vm7, %v223_v35, %v366_v12 }
  0x4b   :  { %v610_v11 = vrot.slane %v608_v63, 4  ;;  %v613_v17 = vrot.slane %v611_v18, 5  ;;  %v617_v47 = vshll.u32 %v5228_v9, 16  ;;  %v648_v1 = vsel %vm5036_vm11, %v5225_v0, %v5199_v48  ;;  %368 = vst [vmem:[#allocation2 + $0x60] sm:$0xf] %v367_v10 }
  0x4c   :  { %v600_v16 = vor.u32 %v599_v19, %v596_v15  ;;  %v605_v22 = vrot.slane %v603_v7, 5  ;;  %v5237_v23 = vld [vmem:[#allocation2 + $0x38] sm:$0xf]  ;;  %v5239_v39 = vld [vmem:[#allocation2 + $0x3c] sm:$0x1]  ;;  %v231_v5 = vor.u32 %v229_v51, %v228_v2  ;;  %v232_v20 = vrot.slane %v228_v2, 4 }
  0x4d   :  { %v614_v43 = vor.u32 %v613_v17, %v610_v11  ;;  %v619_v21 = vrot.slane %v617_v47, 5  ;;  %v622_v31 = vshrl.u32 %v5237_v23, 16  ;;  %v625_v44 = vshll.u32 %v5237_v23, 16  ;;  %v5243_v45 = vld [vmem:[#allocation2 + $0x58] sm:$0xf] }
  0x4e   :  { %v369_v12 = vld [vmem:[#allocation2 + $0x64] sm:$0x1]  ;;  %v372_v49 = vld [vmem:[#allocation2 + $0x68] sm:$0xf]  ;;  %v375_v50 = vld [vmem:[#allocation2 + $0x6c] sm:$0x1] }
  0x4f   :  { %v601_v55 = vrot.slane %v600_v16, 4  ;;  %v631_v58 = vshll.u32 %v5239_v39, 16  ;;  %v5246_v59 = vld [vmem:[#allocation2 + $0x5c] sm:$0x1]  ;;  %v650_v35 = vshrl.u32 %v5243_v45, 16  ;;  %v653_v51 = vshll.u32 %v5243_v45, 16 }
  0x50   :  { %v615_v63 = vrot.slane %v614_v43, 4  ;;  %v624_v18 = vrot.slane %v622_v31, 4  ;;  %v627_v2 = vrot.slane %v625_v44, 5  ;;  %v659_v15 = vshll.u32 %v5246_v59, 16 }
  0x51   :  { %v5253_v19 = vsel %vm5036_vm11, %v601_v55, %v605_v22  ;;  %v633_v7 = vrot.slane %v631_v58, 5  ;;  %v652_v10 = vrot.slane %v650_v35, 4  ;;  %v655_v11 = vrot.slane %v653_v51, 5  ;;  %v378_v51 = vld [vmem:[#allocation2 + $0x70] sm:$0xf] }
  0x52   :  { %v5257_v17 = vcombine.low %v5145_v40, %v5253_v19  ;;  %v5261_v47 = vsel %vm5036_vm11, %v615_v63, %v619_v21  ;;  %v628_v16 = vor.u32 %v627_v2, %v624_v18  ;;  %v661_v43 = vrot.slane %v659_v15, 5  ;;  %v5269_v58 = vld [vmem:[#allocation2 + $0x60] sm:$0xf]  ;;  %v381_v63 = vld [vmem:[#allocation2 + $0x74] sm:$0x1] }
  0x53   :  { %v656_v31 = vor.u32 %v655_v11, %v652_v10  ;;  %v370_v44 = vsel %vm4979_vm8, %v224_v53, %v369_v12  ;;  %v373_v22 = vsel %vm4971_vm7, %v231_v5, %v372_v49  ;;  %v376_v55 = vsel %vm4979_vm8, %v232_v20, %v375_v50  ;;  %v95_v20 = vld [vmem:[%s6109_s0 + $0x70] sm:$0xff]  ;;  %v384_v11 = vld [vmem:[#allocation2 + $0x78] sm:$0xf] }
  0x54   :  { %6144 = vst [vmem:[#allocation9_spill] sm:$0xff] %v5257_v17  ;;  %4124 = vmatprep.mubr.msk.bf16.mxu0 %vm783_vm12, %v5257_v17  ;;  %4164 = vmatprep.mubr.msk.bf16.mxu1 %vm783_vm12, %v5257_v17  ;;  %v629_v40 = vrot.slane %v628_v16, 4  ;;  %371 = vst [vmem:[#allocation2 + $0x64] sm:$0x1] %v370_v44  ;;  %v664_v53 = vshrl.u32 %v5269_v58, 16  ;;  %v667_v21 = vshll.u32 %v5269_v58, 16  ;;  %v3934_v44 = vpack.c.bf16 %v95_v20, %v95_v20 }
  0x55   :  { %374 = vst [vmem:[#allocation2 + $0x68] sm:$0xf] %v373_v22  ;;  %377 = vst [vmem:[#allocation2 + $0x6c] sm:$0x1] %v376_v55  ;;  %v234_v5 = vshrl.u32 %v5207_v57, 16  ;;  %v657_v12 = vrot.slane %v656_v31, 4 }
  0x56   :  { %v237_v49 = vshll.u32 %v5207_v57, 16  ;;  %v242_v50 = vshrl.u32 %v5209_v37, 16  ;;  %v245_v35 = vshll.u32 %v5209_v37, 16  ;;  %v5286_v18 = vsel %vm5036_vm11, %v629_v40, %v633_v7  ;;  %v387_v37 = vld [vmem:[#allocation2 + $0x7c] sm:$0x1] }
  0x57   :  { %6145 = vst [vmem:[#allocation10_spill] sm:$0xff] %v5286_v18  ;;  %v666_v2 = vrot.slane %v664_v53, 4  ;;  %v669_v15 = vrot.slane %v667_v21, 5  ;;  %v236_v10 = vrot.slane %v234_v5, 7  ;;  %v5290_v16 = vcombine.low %v5261_v47, %v5286_v18 }
  0x58   :  { %v5294_v57 = vsel %vm5036_vm11, %v657_v12, %v661_v43  ;;  %v244_v31 = vrot.slane %v242_v50, 7  ;;  %v250_v21 = vshrl.u32 %v5211_v33, 16  ;;  %v253_v5 = vshll.u32 %v5211_v33, 16 }
  0x59   :  { %6146 = vst [vmem:[#allocation11_spill] sm:$0xff] %v5290_v16  ;;  %v3652_v7 = vcombine.low %v648_v1, %v5294_v57  ;;  %v670_v22 = vor.u32 %v669_v15, %v666_v2  ;;  %v239_v55 = vor.u32 %v237_v49, %v236_v10  ;;  %v240_v40 = vrot.slane %v236_v10, 4  ;;  %4125 = vmatmul.mubr.msk.bf16.gmra.mrb[4].mxu0 %vm783_vm12, %v5290_v16  ;;  %v390_v10 = vld [vmem:[#allocation2 + $0x80] sm:$0xf] }
  0x5a   :  { %4165 = vmatmul.mubr.msk.bf16.gmra.mrb[4].mxu1 %vm783_vm12, %v5290_v16  ;;  %v247_v43 = vor.u32 %v245_v35, %v244_v31  ;;  %v248_v53 = vrot.slane %v244_v31, 4  ;;  %v258_v20 = vshrl.u32 %v3934_v44, 16  ;;  %v393_v31 = vld [vmem:[#allocation2 + $0x84] sm:$0x1]  ;;  %v3705_v4 = vrot.slane %v5057_v24, 9 }
  0x5b   :  { %4128 = vmatprep.mubr.msk.bf16.mxu0 %vm783_vm12, %v3652_v7  ;;  %4168 = vmatprep.mubr.msk.bf16.mxu1 %vm783_vm12, %v3652_v7  ;;  %v671_v48 = vrot.slane %v670_v22, 4  ;;  %v379_v0 = vsel %vm4971_vm7, %v239_v55, %v378_v51  ;;  %v382_v1 = vsel %vm4979_vm8, %v240_v40, %v381_v63  ;;  %v5314_v12 = vld [vmem:[#allocation2 + $0x64] sm:$0x1]  ;;  %v396_v7 = vld [vmem:[#allocation2 + $0x88] sm:$0xf]  ;;  %v252_v55 = vrot.slane %v250_v21, 7 }
  0x5c   :  { %v5316_v49 = vld [vmem:[#allocation2 + $0x68] sm:$0xf]  ;;  %v5318_v50 = vld [vmem:[#allocation2 + $0x6c] sm:$0x1]  ;;  %380 = vst [vmem:[#allocation2 + $0x70] sm:$0xf] %v379_v0  ;;  %v385_v33 = vsel %vm4971_vm7, %v247_v43, %v384_v11  ;;  %v388_v35 = vsel %vm4979_vm8, %v248_v53, %v387_v37 }
  0x5d   :  { %383 = vst [vmem:[#allocation2 + $0x74] sm:$0x1] %v382_v1  ;;  %v673_v51 = vshll.u32 %v5314_v12, 16  ;;  %v678_v2 = vshrl.u32 %v5316_v49, 16  ;;  %v681_v63 = vshll.u32 %v5316_v49, 16  ;;  %v687_v15 = vshll.u32 %v5318_v50, 16 }
  0x5e   :  { %386 = vst [vmem:[#allocation2 + $0x78] sm:$0xf] %v385_v33  ;;  %389 = vst [vmem:[#allocation2 + $0x7c] sm:$0x1] %v388_v35  ;;  %v399_v22 = vld [vmem:[#allocation2 + $0x8c] sm:$0x1]  ;;  %v255_v1 = vor.u32 %v253_v5, %v252_v55 }
  0x5f   :  { %v260_v40 = vrot.slane %v258_v20, 7  ;;  %v261_v11 = vshll.u32 %v3934_v44, 16  ;;  %v1321_v43 = vrot.slane %v5059_v25, 5  ;;  %v675_v37 = vrot.slane %v673_v51, 5 }
  0x60   :  { %v680_v53 = vrot.slane %v678_v2, 4  ;;  %v683_v0 = vrot.slane %v681_v63, 5  ;;  %v256_v16 = vrot.slane %v252_v55, 4  ;;  %v689_v18 = vrot.slane %v687_v15, 5 }
  0x61   :  { %v263_v17 = vor.u32 %v261_v11, %v260_v40  ;;  %v264_v56 = vrot.slane %v260_v40, 4  ;;  %v5331_v33 = vsel %vm5036_vm11, %v671_v48, %v675_v37  ;;  %v391_v44 = vsel %vm4971_vm7, %v255_v1, %v390_v10 }
  0x62   :  { %v684_v35 = vor.u32 %v683_v0, %v680_v53  ;;  %v394_v25 = vsel %vm4979_vm8, %v256_v16, %v393_v31  ;;  %392 = vst [vmem:[#allocation2 + $0x80] sm:$0xf] %v391_v44  ;;  %v5348_v2 = vsel %vm5028_vm10, %v3705_v4, %v1321_v43  ;;  %v3708_v16 = vrot.slane %v5090_v42, 9 }
  0x63   :  { %v397_v21 = vsel %vm4971_vm7, %v263_v17, %v396_v7  ;;  %v400_v5 = vsel %vm4979_vm8, %v264_v56, %v399_v22  ;;  %v5342_v51 = vld [vmem:[#allocation2 + $0x70] sm:$0xf]  ;;  %395 = vst [vmem:[#allocation2 + $0x84] sm:$0x1] %v394_v25  ;;  %v5353_v17 = vcombine.low %v5057_v24, %v5061_v26  ;;  %v5363_v31 = vcombine.low %v5065_v28, %v5348_v2 }
  0x64   :  { %v685_v20 = vrot.slane %v684_v35, 4  ;;  %v5344_v48 = vld [vmem:[#allocation2 + $0x74] sm:$0x1]  ;;  %398 = vst [vmem:[#allocation2 + $0x88] sm:$0xf] %v397_v21  ;;  %v692_v15 = vshrl.u32 %v5342_v51, 16  ;;  %v5367_v4 = vcombine.low %v5067_v30, %v5090_v42 }
  0x65   :  { %401 = vst [vmem:[#allocation2 + $0x8c] sm:$0x1] %v400_v5  ;;  %v5355_v56 = vld [vmem:[#allocation2 + $0x78] sm:$0xf]  ;;  %v5357_v63 = vld [vmem:[#allocation2 + $0x7c] sm:$0x1] }
  0x66   :  { %v695_v10 = vshll.u32 %v5342_v51, 16  ;;  %v5371_v24 = vsel %vm5036_vm11, %v685_v20, %v689_v18  ;;  %v701_v26 = vshll.u32 %v5344_v48, 16  ;;  %v706_v7 = vshrl.u32 %v5355_v56, 16 }
  0x67   :  { %v709_v22 = vshll.u32 %v5355_v56, 16  ;;  %v5378_v55 = vcombine.low %v5331_v33, %v5371_v24  ;;  %v694_v28 = vrot.slane %v692_v15, 4  ;;  %v715_v11 = vshll.u32 %v5357_v63, 16 }
  0x68   :  { %v697_v40 = vrot.slane %v695_v10, 5  ;;  %v703_v30 = vrot.slane %v701_v26, 5  ;;  %v708_v43 = vrot.slane %v706_v7, 4  ;;  %v1333_v0 = vrot.slane %v5095_v46, 5 }
  0x69   :  { %6147 = vst [vmem:[#allocation12_spill] sm:$0xff] %v5378_v55  ;;  %v711_v37 = vrot.slane %v709_v22, 5  ;;  %4129 = vmatmul.mubr.msk.bf16.gmra.mrb[8].mxu0 %vm783_vm12, %v5378_v55  ;;  %4169 = vmatmul.mubr.msk.bf16.gmra.mrb[8].mxu1 %vm783_vm12, %v5378_v55  ;;  %v717_v53 = vrot.slane %v715_v11, 5  ;;  %v3709_v1 = vrot.slane %v5205_v32, 9  ;;  %v1337_v44 = vrot.slane %v5221_v54, 5 }
  0x6a   :  { %v698_v18 = vor.u32 %v697_v40, %v694_v28  ;;  %v3710_v25 = vrot.slane %v5216_v62, 9  ;;  %v1341_v21 = vrot.slane %v5228_v9, 5  ;;  %v5390_v20 = vld [vmem:[#allocation2 + $0x80] sm:$0xf]  ;;  %v5392_v15 = vld [vmem:[#allocation2 + $0x84] sm:$0x1]  ;;  %v1334_v10 = vsel %vm5028_vm10, %v3708_v16, %v1333_v0 }
  0x6b   :  { %v712_v35 = vor.u32 %v711_v37, %v708_v43  ;;  %v3711_v26 = vrot.slane %v5237_v23, 9  ;;  %v5399_v46 = vcombine.low %v5205_v32, %v5216_v62  ;;  %v5401_v54 = vld [vmem:[#allocation2 + $0x88] sm:$0xf]  ;;  %v720_v9 = vshrl.u32 %v5390_v20, 16 }
  0x6c   :  { %v699_v5 = vrot.slane %v698_v18, 4  ;;  %v5403_v22 = vld [vmem:[#allocation2 + $0x8c] sm:$0x1]  ;;  %v5408_v28 = vsel %vm5028_vm10, %v3709_v1, %v1337_v44  ;;  %v5411_v40 = vcombine.low %v5136_v61, %v1334_v10  ;;  %v723_v11 = vshll.u32 %v5390_v20, 16 }
  0x6d   :  { %v713_v7 = vrot.slane %v712_v35, 4  ;;  %v729_v43 = vshll.u32 %v5392_v15, 16  ;;  %v734_v37 = vshrl.u32 %v5401_v54, 16  ;;  %v722_v0 = vrot.slane %v720_v9, 4 }
  0x6e   :  { %6148 = vst [vmem:[#allocation13_spill] sm:$0xff] %v5411_v40  ;;  %v5415_v16 = vsel %vm5036_vm11, %v699_v5, %v703_v30  ;;  %v737_v1 = vshll.u32 %v5401_v54, 16  ;;  %v743_v61 = vshll.u32 %v5403_v22, 16  ;;  %v725_v30 = vrot.slane %v723_v11, 5 }
  0x6f   :  { %v5422_v18 = vsel %vm5036_vm11, %v713_v7, %v717_v53  ;;  %v731_v44 = vrot.slane %v729_v43, 5  ;;  %v736_v5 = vrot.slane %v734_v37, 4  ;;  %v5431_v52 = vcombine.low %v1334_v10, %v5408_v28 }
  0x70   :  { %v5428_v35 = vcombine.low %v5415_v16, %v5422_v18  ;;  %v739_v55 = vrot.slane %v737_v1, 5  ;;  %v745_v40 = vrot.slane %v743_v61, 5  ;;  %v726_v53 = vor.u32 %v725_v30, %v722_v0 }
  0x71   :  { %v5439_v7 = vsel %vm5028_vm10, %v3710_v25, %v1341_v21  ;;  %v1345_v9 = vrot.slane %v5239_v39, 5  ;;  %v3712_v11 = vrot.slane %v5024_v6, 9  ;;  %v1349_v37 = vrot.slane %v5132_v60, 5 }
  0x72   :  { %6149 = vst [vmem:[#allocation14_spill] sm:$0xff] %v5428_v35  ;;  %4132 = vmatprep.mubr.msk.bf16.mxu0 %vm783_vm12, %v5428_v35  ;;  %4172 = vmatprep.mubr.msk.bf16.mxu1 %vm783_vm12, %v5428_v35  ;;  %v740_v43 = vor.u32 %v739_v55, %v736_v5  ;;  %v3713_v10 = vrot.slane %v5243_v45, 9  ;;  %v1353_v1 = vrot.slane %v5246_v59, 5  ;;  %v727_v61 = vrot.slane %v726_v53, 4 }
  0x73   :  { %v5448_v35 = vsel %vm5028_vm10, %v3711_v26, %v1345_v9  ;;  %v3714_v0 = vrot.slane %v5269_v58, 9  ;;  %v1357_v25 = vrot.slane %v5314_v12, 5  ;;  %v1350_v60 = vsel %vm5028_vm10, %v3712_v11, %v1349_v37 }
  0x74   :  { %6150 = vst [vmem:[#allocation15_spill] sm:$0xff] %v5448_v35  ;;  %v741_v21 = vrot.slane %v740_v43, 4  ;;  %v5454_v39 = vcombine.low %v5439_v7, %v5448_v35  ;;  %v5460_v59 = vsel %vm5028_vm10, %v3713_v10, %v1353_v1  ;;  %v732_v55 = vsel %vm5036_vm11, %v727_v61, %v731_v44  ;;  %v88_v44 = vld [vmem:[%s6109_s0 + $0x38] sm:$0xff] }
  0x75   :  { %v5465_v26 = vcombine.low %v1350_v60, %v5460_v59  ;;  %v5469_v12 = vsel %vm5028_vm10, %v3714_v0, %v1357_v25  ;;  %v3715_v30 = vrot.slane %v5316_v49, 9  ;;  %v1361_v53 = vrot.slane %v5318_v50, 5 }
  0x76   :  { %v5474_v5 = vsel %vm5036_vm11, %v741_v21, %v745_v40  ;;  %v3716_v9 = vrot.slane %v5342_v51, 9  ;;  %v1365_v11 = vrot.slane %v5344_v48, 5  ;;  %v3717_v37 = vrot.slane %v5355_v56, 9 }
  0x77   :  { %v5483_v43 = vcombine.low %v732_v55, %v5474_v5  ;;  %v1369_v10 = vrot.slane %v5357_v63, 5  ;;  %v3718_v40 = vrot.slane %v5390_v20, 9  ;;  %v5490_v50 = vsel %vm5028_vm10, %v3715_v30, %v1361_v53 }
  0x78   :  { %v5494_v48 = vsel %vm5028_vm10, %v3716_v9, %v1365_v11  ;;  %v1373_v1 = vrot.slane %v5392_v15, 5  ;;  %v3719_v61 = vrot.slane %v5401_v54, 9  ;;  %v5504_v63 = vcombine.low %v5469_v12, %v5490_v50  ;;  %v96_v15 = vld [vmem:[%s6109_s0 + $0x78] sm:$0xff] }
  0x79   :  { %6151 = vst [vmem:[#allocation16_spill] sm:$0xff] %v5483_v43  ;;  %4133 = vmatmul.mubr.msk.bf16.gmra.mrb[12].mxu0 %vm783_vm12, %v5483_v43  ;;  %4173 = vmatmul.mubr.msk.bf16.gmra.mrb[12].mxu1 %vm783_vm12, %v5483_v43  ;;  %v5508_v0 = vsel %vm5028_vm10, %v3717_v37, %v1369_v10  ;;  %v1377_v25 = vrot.slane %v5403_v22, 5  ;;  %v3927_v21 = vpack.c.bf16 %v88_v44, %v88_v44 }
  0x7a   :  { %4140 = vmatprep.mubr.msk.bf16.mxu0 %vm783_vm12, %v5079_v36  ;;  %4180 = vmatprep.mubr.msk.bf16.mxu1 %vm783_vm12, %v5079_v36  ;;  %v5520_v60 = vcombine.low %v5494_v48, %v5508_v0  ;;  %v5524_v30 = vsel %vm5028_vm10, %v3718_v40, %v1373_v1  ;;  %v5528_v22 = vcombine.low %v5243_v45, %v5269_v58 }
  0x7b   :  { %v5532_v53 = vsel %vm5028_vm10, %v3719_v61, %v1377_v25  ;;  %v202_v9 = vshrl.u32 %v3927_v21, 16  ;;  %v205_v11 = vshll.u32 %v3927_v21, 16  ;;  %v5536_v36 = vcombine.low %v5316_v49, %v5342_v51 }
  0x7c   :  { %6152 = vst [vmem:[#allocation17_spill] sm:$0xff] %v5532_v53  ;;  %v5540_v44 = vcombine.low %v5524_v30, %v5532_v53  ;;  %v5544_v37 = vcombine.low %v5355_v56, %v5390_v20  ;;  %v3935_v10 = vpack.c.bf16 %v96_v15, %v96_v15  ;;  %v5548_v40 = vcombine.low %v5253_v19, %v5261_v47  ;;  %v354_v15 = vld [vmem:[#allocation2 + $0x40] sm:$0xf]  ;;  %v357_v47 = vld [vmem:[#allocation2 + $0x44] sm:$0x1] }
  0x7d   :  { %v204_v1 = vrot.slane %v202_v9, 7  ;;  %v5552_v61 = vcombine.low %v5294_v57, %v5331_v33  ;;  %v5556_v25 = vcombine.low %v5371_v24, %v5415_v16  ;;  %v5559_v21 = vcombine.low %v5422_v18, %v732_v55  ;;  %v4747_v57 = vld [vmem:[#allocation3 + $0x28] sm:$0xff]   ;;  %v402_v16 = vld [vmem:[#allocation2 + $0x90] sm:$0xf] }
  0x7e   :  { %v5563_v43 = vcombine.low %v5090_v42, %v5205_v32  ;;  %v266_v53 = vshrl.u32 %v3935_v10, 16  ;;  %v269_v19 = vshll.u32 %v3935_v10, 16  ;;  %v5567_v9 = vcombine.low %v5348_v2, %v5117_v29  ;;  %v4752_v42 = vld [vmem:[%s6110_s1 + $0x28] sm:$0xff]   ;;  %v405_v2 = vld [vmem:[#allocation2 + $0x94] sm:$0x1] }
  0x7f   :  { %v207_v33 = vor.u32 %v205_v11, %v204_v1  ;;  %v208_v35 = vrot.slane %v204_v1, 4  ;;  %v4753_v11 = vld [vmem:[#allocation3 + $0x30] sm:$0xff]   ;;  %v5596_v10 = vcombine.low %v5216_v62, %v5237_v23  ;;  %v5609_v34 = vcombine.low %v5460_v59, %v5469_v12 }
  0x80   :  { %v268_v24 = vrot.slane %v266_v53, 7  ;;  %v5585_v53 = vcombine.low %v5408_v28, %v5439_v7  ;;  %v3670_v28 = vcombine.low %v5024_v6, %v5243_v45  ;;  %v5615_v6 = vcombine.low %v5490_v50, %v5494_v48  ;;  %v4760_v7 = vld [vmem:[%s6110_s1 + $0x48] sm:$0xff]  }
  0x81   :  { %4141 = vmatmul.mubr.msk.bf16.vlgmr.msra.gmra.mrb[0].mxu0 %vm783_vm12, %v5088_v41  ;;  %4181 = vmatmul.mubr.msk.bf16.vlgmr.msra.gmra.mrb[0].mxu1 %vm783_vm12, %v5088_v41  ;;  %v355_v32 = vsel %vm4971_vm7, %v207_v33, %v354_v15  ;;  %v358_v29 = vsel %vm4979_vm8, %v208_v35, %v357_v47  ;;  %v5623_v62 = vcombine.low %v5342_v51, %v5355_v56  ;;  %v4756_v51 = vld [vmem:[%s6110_s1 + $0x38] sm:$0xff]   ;;  %v4757_v56 = vld [vmem:[#allocation3 + $0x40] sm:$0xff]  }
  0x82   :  { %4217 = vmatpush3.bf16.msra.mxu1 %v5176_v14  ;;  %4144 = vmatprep.mubr.msk.bf16.mxu0 %vm783_vm12, %v5563_v43  ;;  %356 = vst [vmem:[#allocation2 + $0x40] sm:$0xf] %v355_v32  ;;  %v271_v18 = vor.u32 %v269_v19, %v268_v24  ;;  %359 = vst [vmem:[#allocation2 + $0x44] sm:$0x1] %v358_v29  ;;  %v272_v55 = vrot.slane %v268_v24, 4  ;;  %v5631_v45 = vcombine.low %v5508_v0, %v5524_v30  ;;  %v4762_v19 = vld [vmem:[#allocation3 + $0x58] sm:$0xff]  }
  0x83   :  { %4184 = vmatprep.mubr.msk.bf16.mxu1 %vm783_vm12, %v5563_v43  ;;  %4218 = vmatprep.subr.bf16.mxu1 %v4747_v57  ;;  %v6154_v47 = vld [vmem:[#allocation8_spill] sm:$0xff]  ;;  %v6155_v32 = vld [vmem:[#allocation10_spill] sm:$0xff] }
  0x84   :  { %4197 = vmatpush3.bf16.msra.mxu0 %v5186_v38  ;;  %v403_v14 = vsel %vm4971_vm7, %v271_v18, %v402_v16  ;;  %v406_v35 = vsel %vm4979_vm8, %v272_v55, %v405_v2  ;;  %v5619_v38 = vcombine.low %v5269_v58, %v5316_v49  ;;  %v5639_v58 = vcombine.low %v5390_v20, %v5401_v54  ;;  %v4754_v49 = vld [vmem:[#allocation3 + $0x38] sm:$0xff]   ;;  %v4758_v20 = vld [vmem:[#allocation3 + $0x48] sm:$0xff]   ;;  %v4767_v55 = vld [vmem:[%s6110_s1 + $0x60] sm:$0xff]  }
  0x85   :  { %4198 = vmatprep.subr.bf16.mxu0 %v4752_v42  ;;  %404 = vst [vmem:[#allocation2 + $0x90] sm:$0xf] %v403_v14  ;;  %407 = vst [vmem:[#allocation2 + $0x94] sm:$0x1] %v406_v35 }
  0x86   :  { %4219 = vmatpush3.bf16.msra.mxu1 %v4747_v57 }
  0x87   :  { %4256 = vmatprep.subr.bf16.mxu1 %v4753_v11 }
  0x88   :  { %4199 = vmatpush3.bf16.msra.mxu0 %v4752_v42  ;;  %v4765_v42 = vld [vmem:[#allocation3 + $0x60] sm:$0xff]  }
  0x89   :  { %4145 = vmatmul.mubr.msk.bf16.gmra.mrb[4].mxu0 %vm783_vm12, %v5596_v10  ;;  %4185 = vmatmul.mubr.msk.bf16.gmra.mrb[4].mxu1 %vm783_vm12, %v5596_v10  ;;  %v5696_v59 = vld [vmem:[#allocation2 + $0x40] sm:$0xf]  ;;  %v425_v30 = vld [vmem:[#allocation2 + $0x44] sm:$0x1] }
  0x8a   :  { %4148 = vmatprep.mubr.msk.bf16.mxu0 %vm783_vm12, %v3670_v28  ;;  %4188 = vmatprep.mubr.msk.bf16.mxu1 %vm783_vm12, %v3670_v28  ;;  %v1967_v12 = vshll.u32 %v5696_v59, 16 }
  0x8b   :  { %4236 = vmatprep.subr.bf16.mxu0 %v4755_v27 }
  0x8c   :  { %v1969_v0 = vrot.slane %v1967_v12, 5  ;;  %v445_v18 = vld [vmem:[#allocation2 + $0x94] sm:$0x1]  ;;  %v5861_v12 = vld [vmem:[#allocation2 + $0x98] sm:$0xf] }
  0x91   :  { %4149 = vmatmul.mubr.msk.bf16.gmra.mrb[8].mxu0 %vm783_vm12, %v5619_v38  ;;  %4189 = vmatmul.mubr.msk.bf16.gmra.mrb[8].mxu1 %vm783_vm12, %v5619_v38 }
  0x92   :  { %4152 = vmatprep.mubr.msk.bf16.mxu0 %vm783_vm12, %v5623_v62  ;;  %4192 = vmatprep.mubr.msk.bf16.mxu1 %vm783_vm12, %v5623_v62 }
  0x99   :  { %4153 = vmatmul.mubr.msk.bf16.gmra.mrb[12].mxu0 %vm783_vm12, %v5639_v58  ;;  %4193 = vmatmul.mubr.msk.bf16.gmra.mrb[12].mxu1 %vm783_vm12, %v5639_v58 }
  0x9a   :  { %4200 = vmatprep.mubr.msk.bf16.mxu0 %vm783_vm12, %v5363_v31  ;;  %4220 = vmatprep.mubr.msk.bf16.mxu1 %vm783_vm12, %v5363_v31  ;;  %v4759_v31 = vld [vmem:[%s6110_s1 + $0x40] sm:$0xff]  }
  0xa1   :  { %4201 = vmatmul.mubr.msk.bf16.vlgmr.msra.gmra.mrb[0].mxu0 %vm783_vm12, %v5149_v3  ;;  %4221 = vmatmul.mubr.msk.bf16.vlgmr.msra.gmra.mrb[0].mxu1 %vm783_vm12, %v5149_v3 }
  0xa2   :  { %4257 = vmatpush3.bf16.msra.mxu1 %v4753_v11  ;;  %4204 = vmatprep.mubr.msk.bf16.mxu0 %vm783_vm12, %v5431_v52  ;;  %v1987_v11 = vshll.u32 %v445_v18, 16 }
  0xa3   :  { %4224 = vmatprep.mubr.msk.bf16.mxu1 %vm783_vm12, %v5431_v52  ;;  %4258 = vmatprep.subr.bf16.mxu1 %v4754_v49 }
  0xa4   :  { %4237 = vmatpush3.bf16.msra.mxu0 %v4755_v27  ;;  %v1989_v35 = vrot.slane %v1987_v11, 5  ;;  %v4766_v27 = vld [vmem:[#allocation3 + $0x68] sm:$0xff]  }
  0xa5   :  { %4238 = vmatprep.subr.bf16.mxu0 %v4756_v51 }
  0xa6   :  { %4259 = vmatpush3.bf16.msra.mxu1 %v4754_v49  ;;  %v6156_v49 = vld [vmem:[#allocation13_spill] sm:$0xff] }
  0xa7   :  { %4296 = vmatprep.subr.bf16.mxu1 %v4757_v56 }
  0xa8   :  { %4239 = vmatpush3.bf16.msra.mxu0 %v4756_v51  ;;  %v4769_v51 = vld [vmem:[#allocation3 + $0x70] sm:$0xff]  }
  0xa9   :  { %4205 = vmatmul.mubr.msk.bf16.gmra.mrb[4].mxu0 %vm783_vm12, %v5454_v39  ;;  %4225 = vmatmul.mubr.msk.bf16.gmra.mrb[4].mxu1 %vm783_vm12, %v5454_v39 }
  0xaa   :  { %4208 = vmatprep.mubr.msk.bf16.mxu0 %vm783_vm12, %v5465_v26  ;;  %4228 = vmatprep.mubr.msk.bf16.mxu1 %vm783_vm12, %v5465_v26  ;;  %v3751_v26 = vcombine.low %v5237_v23, %v5696_v59  ;;  %v5719_v23 = vld [vmem:[#allocation2 + $0x90] sm:$0xf] }
  0xab   :  { %4276 = vmatprep.subr.bf16.mxu0 %v4759_v31  ;;  %v3755_v50 = vcombine.low %v5401_v54, %v5719_v23  ;;  %v4764_v54 = vld [vmem:[%s6110_s1 + $0x58] sm:$0xff]   ;;  %v1978_v33 = vshrl.u32 %v5719_v23, 16  ;;  %v1981_v24 = vshll.u32 %v5719_v23, 16 }
  0xad   :  { %v1980_v29 = vrot.slane %v1978_v33, 4  ;;  %v1983_v2 = vrot.slane %v1981_v24, 5 }
  0xb1   :  { %4209 = vmatmul.mubr.msk.bf16.gmra.mrb[8].mxu0 %vm783_vm12, %v5504_v63  ;;  %4229 = vmatmul.mubr.msk.bf16.gmra.mrb[8].mxu1 %vm783_vm12, %v5504_v63 }
  0xb2   :  { %4212 = vmatprep.mubr.msk.bf16.mxu0 %vm783_vm12, %v5520_v60  ;;  %4232 = vmatprep.mubr.msk.bf16.mxu1 %vm783_vm12, %v5520_v60 }
  0xb9   :  { %4213 = vmatmul.mubr.msk.bf16.gmra.mrb[12].mxu0 %vm783_vm12, %v5540_v44  ;;  %4233 = vmatmul.mubr.msk.bf16.gmra.mrb[12].mxu1 %vm783_vm12, %v5540_v44 }
  0xba   :  { %4240 = vmatprep.mubr.msk.bf16.mxu0 %vm783_vm12, %v5353_v17  ;;  %4260 = vmatprep.mubr.msk.bf16.mxu1 %vm783_vm12, %v5353_v17  ;;  %v4761_v17 = vld [vmem:[#allocation3 + $0x50] sm:$0xff]  }
  0xc1   :  { %4241 = vmatmul.mubr.msk.bf16.vlgmr.msra.gmra.mrb[0].mxu0 %vm783_vm12, %v5367_v4  ;;  %4261 = vmatmul.mubr.msk.bf16.vlgmr.msra.gmra.mrb[0].mxu1 %vm783_vm12, %v5367_v4  ;;  %v4763_v4 = vld [vmem:[%s6110_s1 + $0x50] sm:$0xff]  }
  0xc2   :  { %4297 = vmatpush3.bf16.msra.mxu1 %v4757_v56  ;;  %4244 = vmatprep.mubr.msk.bf16.mxu0 %vm783_vm12, %v5399_v46  ;;  %v6157_v56 = vld [vmem:[#allocation15_spill] sm:$0xff] }
  0xc3   :  { %4264 = vmatprep.mubr.msk.bf16.mxu1 %vm783_vm12, %v5399_v46  ;;  %4298 = vmatprep.subr.bf16.mxu1 %v4758_v20  ;;  %v1964_v46 = vshrl.u32 %v5696_v59, 16 }
  0xc4   :  { %4277 = vmatpush3.bf16.msra.mxu0 %v4759_v31 }
  0xc5   :  { %4278 = vmatprep.subr.bf16.mxu0 %v4760_v7  ;;  %v1966_v48 = vrot.slane %v1964_v46, 4 }
  0xc6   :  { %4299 = vmatpush3.bf16.msra.mxu1 %v4758_v20  ;;  %v4771_v20 = vld [vmem:[%s6110_s1 + $0x70] sm:$0xff]  }
  0xc7   :  { %4336 = vmatprep.subr.bf16.mxu1 %v4761_v17 }
  0xc8   :  { %4279 = vmatpush3.bf16.msra.mxu0 %v4760_v7  ;;  %v2283_v7 = vrot.slane %v445_v18, 5 }
  0xc9   :  { %4245 = vmatmul.mubr.msk.bf16.gmra.mrb[4].mxu0 %vm783_vm12, %v3751_v26  ;;  %4265 = vmatmul.mubr.msk.bf16.gmra.mrb[4].mxu1 %vm783_vm12, %v3751_v26 }
  0xca   :  { %4248 = vmatprep.mubr.msk.bf16.mxu0 %vm783_vm12, %v5528_v22  ;;  %4268 = vmatprep.mubr.msk.bf16.mxu1 %vm783_vm12, %v5528_v22  ;;  %v6153_v22 = vld [vmem:[#allocation6_spill] sm:$0xff] }
  0xcb   :  { %4316 = vmatprep.subr.bf16.mxu0 %v4763_v4 }
  0xd1   :  { %4249 = vmatmul.mubr.msk.bf16.gmra.mrb[8].mxu0 %vm783_vm12, %v5536_v36  ;;  %4269 = vmatmul.mubr.msk.bf16.gmra.mrb[8].mxu1 %vm783_vm12, %v5536_v36  ;;  %v1970_v36 = vor.u32 %v1969_v0, %v1966_v48  ;;  %v427_v0 = vld [vmem:[#allocation2 + $0x4c] sm:$0x1] }
  0xd2   :  { %4252 = vmatprep.mubr.msk.bf16.mxu0 %vm783_vm12, %v5544_v37  ;;  %4272 = vmatprep.mubr.msk.bf16.mxu1 %vm783_vm12, %v5544_v37  ;;  %v1973_v37 = vshll.u32 %v425_v30, 16 }
  0xd3   :  { %v1971_v1 = vrot.slane %v1970_v36, 4 }
  0xd4   :  { %v1975_v15 = vrot.slane %v1973_v37, 5  ;;  %v4774_v37 = vld [vmem:[#allocation3 + $0x88] sm:$0xff]  }
  0xd6   :  { %v5742_v57 = vsel %vm5036_vm11, %v1971_v1, %v1975_v15  ;;  %v6160_v1 = vld [vmem:[#allocation9_spill] sm:$0xff]  ;;  %v2846_v15 = vshrl.u32 %v5861_v12, 16 }
  0xd7   :  { %v3779_v16 = vcombine.low %v6155_v32, %v5742_v57  ;;  %v447_v32 = vld [vmem:[#allocation2 + $0x9c] sm:$0x1] }
  0xd8   :  { %v2848_v24 = vrot.slane %v2846_v15, 4 }
  0xd9   :  { %4253 = vmatmul.mubr.msk.bf16.gmra.mrb[12].mxu0 %vm783_vm12, %v3755_v50  ;;  %4273 = vmatmul.mubr.msk.bf16.gmra.mrb[12].mxu1 %vm783_vm12, %v3755_v50 }
  0xda   :  { %4280 = vmatprep.mubr.msk.bf16.mxu0 %vm783_vm12, %v6153_v22  ;;  %4300 = vmatprep.mubr.msk.bf16.mxu1 %vm783_vm12, %v6153_v22 }
  0xe1   :  { %4281 = vmatmul.mubr.msk.bf16.vlgmr.msra.gmra.mrb[0].mxu0 %vm783_vm12, %v6154_v47  ;;  %4301 = vmatmul.mubr.msk.bf16.vlgmr.msra.gmra.mrb[0].mxu1 %vm783_vm12, %v6154_v47  ;;  %v6161_v47 = vld [vmem:[#allocation11_spill] sm:$0xff] }
  0xe2   :  { %4337 = vmatpush3.bf16.msra.mxu1 %v4761_v17  ;;  %4284 = vmatprep.mubr.msk.bf16.mxu0 %vm783_vm12, %v5548_v40 }
  0xe3   :  { %4304 = vmatprep.mubr.msk.bf16.mxu1 %vm783_vm12, %v5548_v40  ;;  %4338 = vmatprep.subr.bf16.mxu1 %v4762_v19  ;;  %v1984_v40 = vor.u32 %v1983_v2, %v1980_v29  ;;  %v2855_v2 = vshll.u32 %v447_v32, 16 }
  0xe4   :  { %4317 = vmatpush3.bf16.msra.mxu0 %v4763_v4  ;;  %v5836_v4 = vld [vmem:[#allocation2 + $0x48] sm:$0xf] }
  0xe5   :  { %4318 = vmatprep.subr.bf16.mxu0 %v4764_v54  ;;  %v1985_v14 = vrot.slane %v1984_v40, 4  ;;  %v3834_v46 = vcombine.low %v5696_v59, %v5836_v4  ;;  %v6164_v40 = vld [vmem:[#allocation16_spill] sm:$0xff] }
  0xe6   :  { %4339 = vmatpush3.bf16.msra.mxu1 %v4762_v19  ;;  %v2849_v19 = vshll.u32 %v5861_v12, 16 }
  0xe7   :  { %4376 = vmatprep.subr.bf16.mxu1 %v4765_v42 }
  0xe8   :  { %4319 = vmatpush3.bf16.msra.mxu0 %v4764_v54 }
  0xe9   :  { %4285 = vmatmul.mubr.msk.bf16.gmra.mrb[4].mxu0 %vm783_vm12, %v3779_v16  ;;  %4305 = vmatmul.mubr.msk.bf16.gmra.mrb[4].mxu1 %vm783_vm12, %v3779_v16  ;;  %v6162_v16 = vld [vmem:[#allocation12_spill] sm:$0xff] }
  0xea   :  { %4288 = vmatprep.mubr.msk.bf16.mxu0 %vm783_vm12, %v5552_v61  ;;  %4308 = vmatprep.mubr.msk.bf16.mxu1 %vm783_vm12, %v5552_v61  ;;  %v5769_v61 = vsel %vm5036_vm11, %v1985_v14, %v1989_v35  ;;  %v3878_v35 = vrot.slane %v5836_v4, 9 }
  0xeb   :  { %4356 = vmatprep.subr.bf16.mxu0 %v4767_v55  ;;  %v3783_v28 = vcombine.low %v5474_v5, %v5769_v61  ;;  %v4768_v5 = vld [vmem:[%s6110_s1 + $0x68] sm:$0xff]  }
  0xf1   :  { %4289 = vmatmul.mubr.msk.bf16.gmra.mrb[8].mxu0 %vm783_vm12, %v5556_v25  ;;  %4309 = vmatmul.mubr.msk.bf16.gmra.mrb[8].mxu1 %vm783_vm12, %v5556_v25  ;;  %v3804_v25 = vrot.slane %v5696_v59, 9  ;;  %v2835_v59 = vshll.u32 %v5836_v4, 16 }
  0xf2   :  { %4292 = vmatprep.mubr.msk.bf16.mxu0 %vm783_vm12, %v5559_v21  ;;  %4312 = vmatprep.mubr.msk.bf16.mxu1 %vm783_vm12, %v5559_v21  ;;  %v2279_v21 = vrot.slane %v425_v30, 5 }
  0xf3   :  { %v2837_v48 = vrot.slane %v2835_v59, 5 }
  0xf9   :  { %4293 = vmatmul.mubr.msk.bf16.gmra.mrb[12].mxu0 %vm783_vm12, %v3783_v28  ;;  %4313 = vmatmul.mubr.msk.bf16.gmra.mrb[12].mxu1 %vm783_vm12, %v3783_v28  ;;  %v3123_v28 = vrot.slane %v427_v0, 5 }
  0xfa   :  { %4320 = vmatprep.mubr.msk.bf16.mxu0 %vm783_vm12, %v5567_v9  ;;  %4340 = vmatprep.mubr.msk.bf16.mxu1 %vm783_vm12, %v5567_v9  ;;  %v5791_v9 = vsel %vm5028_vm10, %v3804_v25, %v2279_v21  ;;  %v5945_v25 = vld [vmem:[%s6113_s4] ss:$0 sm:$0xff] }
  0xfb   :  { %v3809_v31 = vcombine.low %v6157_v56, %v5791_v9  ;;  %v3124_v13 = vsel %vm5028_vm10, %v3878_v35, %v3123_v28 }
 0x101   :  { %4321 = vmatmul.mubr.msk.bf16.vlgmr.msra.gmra.mrb[0].mxu0 %vm783_vm12, %v6156_v49  ;;  %4341 = vmatmul.mubr.msk.bf16.vlgmr.msra.gmra.mrb[0].mxu1 %vm783_vm12, %v6156_v49 }
 0x102   :  { %4377 = vmatpush3.bf16.msra.mxu1 %v4765_v42  ;;  %4324 = vmatprep.mubr.msk.bf16.mxu0 %vm783_vm12, %v5585_v53  ;;  %v2851_v42 = vrot.slane %v2849_v19, 5 }
 0x103   :  { %4344 = vmatprep.mubr.msk.bf16.mxu1 %vm783_vm12, %v5585_v53  ;;  %4378 = vmatprep.subr.bf16.mxu1 %v4766_v27  ;;  %v3805_v53 = vrot.slane %v5719_v23, 9 }
 0x104   :  { %4357 = vmatpush3.bf16.msra.mxu0 %v4767_v55  ;;  %v2852_v29 = vor.u32 %v2851_v42, %v2848_v24  ;;  %v6163_v55 = vld [vmem:[#allocation14_spill] sm:$0xff] }
 0x105   :  { %4358 = vmatprep.subr.bf16.mxu0 %v4768_v5  ;;  %v5817_v17 = vsel %vm5028_vm10, %v3805_v53, %v2283_v7 }
 0x106   :  { %4379 = vmatpush3.bf16.msra.mxu1 %v4766_v27  ;;  %v2853_v18 = vrot.slane %v2852_v29, 4 }
 0x107   :  { %4416 = vmatprep.subr.bf16.mxu1 %v4769_v51 }
 0x108   :  { %4359 = vmatpush3.bf16.msra.mxu0 %v4768_v5 }
 0x109   :  { %4325 = vmatmul.mubr.msk.bf16.gmra.mrb[4].mxu0 %vm783_vm12, %v3809_v31  ;;  %4345 = vmatmul.mubr.msk.bf16.gmra.mrb[4].mxu1 %vm783_vm12, %v3809_v31 }
 0x10a   :  { %4328 = vmatprep.mubr.msk.bf16.mxu0 %vm783_vm12, %v5609_v34  ;;  %4348 = vmatprep.mubr.msk.bf16.mxu1 %vm783_vm12, %v5609_v34  ;;  %v6158_v34 = vld [vmem:[#allocation17_spill] sm:$0xff] }
 0x10b   :  { %4396 = vmatprep.subr.bf16.mxu0 %v4771_v20  ;;  %v3813_v26 = vcombine.low %v6158_v34, %v5817_v17 }
 0x111   :  { %4329 = vmatmul.mubr.msk.bf16.gmra.mrb[8].mxu0 %vm783_vm12, %v5615_v6  ;;  %4349 = vmatmul.mubr.msk.bf16.gmra.mrb[8].mxu1 %vm783_vm12, %v5615_v6  ;;  %v4770_v6 = vld [vmem:[#allocation3 + $0x78] sm:$0xff]  }
 0x112   :  { %4332 = vmatprep.mubr.msk.bf16.mxu0 %vm783_vm12, %v5631_v45  ;;  %4352 = vmatprep.mubr.msk.bf16.mxu1 %vm783_vm12, %v5631_v45  ;;  %v4772_v45 = vld [vmem:[%s6110_s1 + $0x78] sm:$0xff]  }
 0x119   :  { %4333 = vmatmul.mubr.msk.bf16.gmra.mrb[12].mxu0 %vm783_vm12, %v3813_v26  ;;  %4353 = vmatmul.mubr.msk.bf16.gmra.mrb[12].mxu1 %vm783_vm12, %v3813_v26 }
 0x11a   :  { %4360 = vmatprep.mubr.msk.bf16.mxu0 %vm783_vm12, %v5088_v41  ;;  %4380 = vmatprep.mubr.msk.bf16.mxu1 %vm783_vm12, %v5088_v41  ;;  %v4773_v41 = vld [vmem:[#allocation3 + $0x80] sm:$0xff]  }
 0x121   :  { %4361 = vmatmul.mubr.msk.bf16.vlgmr.msra.gmra.mrb[0].mxu0 %vm783_vm12, %v5563_v43  ;;  %4381 = vmatmul.mubr.msk.bf16.vlgmr.msra.gmra.mrb[0].mxu1 %vm783_vm12, %v5563_v43  ;;  %v4775_v43 = vld [vmem:[%s6110_s1 + $0x80] sm:$0xff]  }
 0x122   :  { %4417 = vmatpush3.bf16.msra.mxu1 %v4769_v51  ;;  %4364 = vmatprep.mubr.msk.bf16.mxu0 %vm783_vm12, %v5596_v10 }
 0x123   :  { %4384 = vmatprep.mubr.msk.bf16.mxu1 %vm783_vm12, %v5596_v10  ;;  %4418 = vmatprep.subr.bf16.mxu1 %v4770_v6  ;;  %v2832_v10 = vshrl.u32 %v5836_v4, 16 }
 0x124   :  { %4397 = vmatpush3.bf16.msra.mxu0 %v4771_v20 }
 0x125   :  { %4398 = vmatprep.subr.bf16.mxu0 %v4772_v45  ;;  %v2834_v50 = vrot.slane %v2832_v10, 4 }
 0x126   :  { %4419 = vmatpush3.bf16.msra.mxu1 %v4770_v6 }
 0x127   :  { %4456 = vmatprep.subr.bf16.mxu1 %v4773_v41  ;;  %v2838_v30 = vor.u32 %v2837_v48, %v2834_v50 }
 0x128   :  { %4399 = vmatpush3.bf16.msra.mxu0 %v4772_v45 }
 0x129   :  { %4365 = vmatmul.mubr.msk.bf16.gmra.mrb[4].mxu0 %vm783_vm12, %v3834_v46  ;;  %4385 = vmatmul.mubr.msk.bf16.gmra.mrb[4].mxu1 %vm783_vm12, %v3834_v46  ;;  %v2839_v22 = vrot.slane %v2838_v30, 4 }
 0x12a   :  { %4368 = vmatprep.mubr.msk.bf16.mxu0 %vm783_vm12, %v5619_v38  ;;  %4388 = vmatprep.mubr.msk.bf16.mxu1 %vm783_vm12, %v5619_v38  ;;  %v3835_v38 = vcombine.low %v5719_v23, %v5861_v12  ;;  %v4776_v23 = vld [vmem:[%s6110_s1 + $0x88] sm:$0xff]  }
 0x12b   :  { %4436 = vmatprep.subr.bf16.mxu0 %v4775_v43 }
 0x131   :  { %4369 = vmatmul.mubr.msk.bf16.gmra.mrb[8].mxu0 %vm783_vm12, %v5623_v62  ;;  %4389 = vmatmul.mubr.msk.bf16.gmra.mrb[8].mxu1 %vm783_vm12, %v5623_v62  ;;  %v6159_v62 = vld [vmem:[#allocation7_spill] sm:$0xff] }
 0x132   :  { %4372 = vmatprep.mubr.msk.bf16.mxu0 %vm783_vm12, %v5639_v58  ;;  %4392 = vmatprep.mubr.msk.bf16.mxu1 %vm783_vm12, %v5639_v58  ;;  %v2841_v58 = vshll.u32 %v427_v0, 16 }
 0x134   :  { %v2843_v36 = vrot.slane %v2841_v58, 5 }
 0x136   :  { %v2844_v54 = vsel %vm5036_vm11, %v2839_v22, %v2843_v36 }
 0x137   :  { %v3856_v33 = vcombine.low %v5742_v57, %v2844_v54  ;;  %v2857_v57 = vrot.slane %v2855_v2, 5 }
 0x139   :  { %4373 = vmatmul.mubr.msk.bf16.gmra.mrb[12].mxu0 %vm783_vm12, %v3835_v38  ;;  %4393 = vmatmul.mubr.msk.bf16.gmra.mrb[12].mxu1 %vm783_vm12, %v3835_v38  ;;  %v2858_v11 = vsel %vm5036_vm11, %v2853_v18, %v2857_v57 }
 0x13a   :  { %4400 = vmatprep.mubr.msk.bf16.mxu0 %vm783_vm12, %v6159_v62  ;;  %4420 = vmatprep.mubr.msk.bf16.mxu1 %vm783_vm12, %v6159_v62  ;;  %v3857_v14 = vcombine.low %v5769_v61, %v2858_v11  ;;  %v3127_v61 = vrot.slane %v447_v32, 5 }
 0x141   :  { %4401 = vmatmul.mubr.msk.bf16.vlgmr.msra.gmra.mrb[0].mxu0 %vm783_vm12, %v6160_v1  ;;  %4421 = vmatmul.mubr.msk.bf16.vlgmr.msra.gmra.mrb[0].mxu1 %vm783_vm12, %v6160_v1 }
 0x142   :  { %4457 = vmatpush3.bf16.msra.mxu1 %v4773_v41  ;;  %4404 = vmatprep.mubr.msk.bf16.mxu0 %vm783_vm12, %v6161_v47 }
 0x143   :  { %4424 = vmatprep.mubr.msk.bf16.mxu1 %vm783_vm12, %v6161_v47  ;;  %4458 = vmatprep.subr.bf16.mxu1 %v4774_v37 }
 0x144   :  { %4437 = vmatpush3.bf16.msra.mxu0 %v4775_v43 }
 0x145   :  { %4438 = vmatprep.subr.bf16.mxu0 %v4776_v23 }
 0x146   :  { %4459 = vmatpush3.bf16.msra.mxu1 %v4774_v37 }
 0x148   :  { %4439 = vmatpush3.bf16.msra.mxu0 %v4776_v23  ;;  %v5969_v23 = vld [vmem:[%s6112_s3] ss:$0 sm:$0xff] }
 0x149   :  { %4405 = vmatmul.mubr.msk.bf16.gmra.mrb[4].mxu0 %vm783_vm12, %v3856_v33  ;;  %4425 = vmatmul.mubr.msk.bf16.gmra.mrb[4].mxu1 %vm783_vm12, %v3856_v33 }
 0x14a   :  { %4408 = vmatprep.mubr.msk.bf16.mxu0 %vm783_vm12, %v6162_v16  ;;  %4428 = vmatprep.mubr.msk.bf16.mxu1 %vm783_vm12, %v6162_v16 }
 0x151   :  { %4409 = vmatmul.mubr.msk.bf16.gmra.mrb[8].mxu0 %vm783_vm12, %v6163_v55  ;;  %4429 = vmatmul.mubr.msk.bf16.gmra.mrb[8].mxu1 %vm783_vm12, %v6163_v55 }
 0x152   :  { %4412 = vmatprep.mubr.msk.bf16.mxu0 %vm783_vm12, %v6164_v40  ;;  %4432 = vmatprep.mubr.msk.bf16.mxu1 %vm783_vm12, %v6164_v40 }
 0x159   :  { %4413 = vmatmul.mubr.msk.bf16.gmra.mrb[12].mxu0 %vm783_vm12, %v3857_v14  ;;  %4433 = vmatmul.mubr.msk.bf16.gmra.mrb[12].mxu1 %vm783_vm12, %v3857_v14 }
 0x15a   :  { %4440 = vmatprep.mubr.msk.bf16.mxu0 %vm783_vm12, %v5149_v3  ;;  %4460 = vmatprep.mubr.msk.bf16.mxu1 %vm783_vm12, %v5149_v3  ;;  %v3880_v3 = vcombine.low %v5791_v9, %v3124_v13 }
 0x161   :  { %4441 = vmatmul.mubr.msk.bf16.vlgmr.msra.gmra.mrb[0].mxu0 %vm783_vm12, %v5431_v52  ;;  %4461 = vmatmul.mubr.msk.bf16.vlgmr.msra.gmra.mrb[0].mxu1 %vm783_vm12, %v5431_v52  ;;  %v3879_v52 = vrot.slane %v5861_v12, 9 }
 0x162   :  { %4444 = vmatprep.mubr.msk.bf16.mxu0 %vm783_vm12, %v5454_v39  ;;  %4464 = vmatprep.mubr.msk.bf16.mxu1 %vm783_vm12, %v5454_v39 }
 0x163   :  { %v3128_v39 = vsel %vm5028_vm10, %v3879_v52, %v3127_v61 }
 0x169   :  { %4445 = vmatmul.mubr.msk.bf16.gmra.mrb[4].mxu0 %vm783_vm12, %v3880_v3  ;;  %4465 = vmatmul.mubr.msk.bf16.gmra.mrb[4].mxu1 %vm783_vm12, %v3880_v3 }
 0x16a   :  { %4448 = vmatprep.mubr.msk.bf16.mxu0 %vm783_vm12, %v5504_v63  ;;  %4468 = vmatprep.mubr.msk.bf16.mxu1 %vm783_vm12, %v5504_v63  ;;  %v3881_v63 = vcombine.low %v5817_v17, %v3128_v39 }
 0x171   :  { %4449 = vmatmul.mubr.msk.bf16.gmra.mrb[8].mxu0 %vm783_vm12, %v5520_v60  ;;  %4469 = vmatmul.mubr.msk.bf16.gmra.mrb[8].mxu1 %vm783_vm12, %v5520_v60 }
 0x172   :  { %4452 = vmatprep.mubr.msk.bf16.mxu0 %vm783_vm12, %v5540_v44  ;;  %4472 = vmatprep.mubr.msk.bf16.mxu1 %vm783_vm12, %v5540_v44 }
 0x179   :  { %4453 = vmatmul.mubr.msk.bf16.gmra.mrb[12].mxu0 %vm783_vm12, %v3881_v63  ;;  %4473 = vmatmul.mubr.msk.bf16.gmra.mrb[12].mxu1 %vm783_vm12, %v3881_v63 }
 0x234   :  { %v4442_v60 = vpop.f32.mrb[0].mxu0  ;;  %v4462_v21 = vpop.f32.mrb[0].mxu1 }
 0x235   :  { %v3421_v27 = vadd.f32 %v4462_v21, %v5945_v25  ;;  %v3185_v49 = vpop.f32.mrb[1].mxu0  ;;  %v3310_v44 = vpop.f32.mrb[1].mxu1  ;;  %v5973_v24 = vadd.f32 %v4442_v60, %v5969_v23 }
 0x236   :  { %v3419_v8 = vadd.f32 %v5945_v25, %v3310_v44  ;;  %v5949_v5 = vpop.f32.mrb[2].mxu0  ;;  %v4463_v9 = vpop.f32.mrb[2].mxu1  ;;  %v5981_v40 = vadd.f32 %v5969_v23, %v3185_v49 }
 0x237   :  { %v3469_v51 = vmul.f32 0.01, %v3421_v27  ;;  %v3422_v56 = vadd.f32 %v4463_v9, %v5945_v25  ;;  %v5952_v31 = vpop.f32.mrb[3].mxu0  ;;  %v3313_v20 = vpop.f32.mrb[3].mxu1  ;;  %v5989_v60 = vmul.f32 0.01, %v5973_v24  ;;  %v5993_v44 = vadd.f32 %v5949_v5, %v5969_v23 }
 0x238   :  { %v3467_v53 = vmul.f32 0.01, %v3419_v8  ;;  %v3420_v7 = vadd.f32 %v5945_v25, %v3313_v20 }
 0x239   :  { %v3485_v17 = vmax.f32 %v3421_v27, %v3469_v51  ;;  %v3470_v34 = vmul.f32 0.01, %v3422_v56 }
 0x23a   :  { %v3483_v26 = vmax.f32 %v3419_v8, %v3467_v53  ;;  %v3468_v6 = vmul.f32 0.01, %v3420_v7 }
 0x23b   :  { %v3906_v45 = vmul.f32 -1.442695, %v3485_v17  ;;  %v3486_v4 = vmax.f32 %v3422_v56, %v3470_v34  ;;  %v3435_v56 = vmul.f32 0.01, %v5981_v40 }
 0x23c   :  { %v3904_v41 = vmul.f32 -1.442695, %v3483_v26  ;;  %v3484_v46 = vmax.f32 %v3420_v7, %v3468_v6  ;;  %v5955_v43 = vpop.f32.mrb[4].mxu0  ;;  %v4466_v10 = vpop.f32.mrb[4].mxu1  ;;  %v5998_v26 = vadd.f32 %v5969_v23, %v5952_v31 }
 0x23d   :  { %4777 = vpow2.f32 %v3906_v45  ;;  %v3907_v59 = vmul.f32 -1.442695, %v3486_v4  ;;  %v3425_v12 = vadd.f32 %v4466_v10, %v5945_v25  ;;  %v5958_v38 = vpop.f32.mrb[5].mxu0  ;;  %v3326_v50 = vpop.f32.mrb[5].mxu1  ;;  %v3438_v4 = vmul.f32 0.01, %v5993_v44 }
 0x23e   :  { %4779 = vpow2.f32 %v3904_v41  ;;  %v3905_v48 = vmul.f32 -1.442695, %v3484_v46  ;;  %v3423_v0 = vadd.f32 %v5945_v25, %v3326_v50  ;;  %v5961_v62 = vpop.f32.mrb[6].mxu0  ;;  %v4467_v30 = vpop.f32.mrb[6].mxu1 }
 0x23f   :  { %4781 = vpow2.f32 %v3907_v59  ;;  %v3473_v58 = vmul.f32 0.01, %v3425_v12  ;;  %v5963_v22 = vpop.f32.mrb[7].mxu0  ;;  %v3329_v36 = vpop.f32.mrb[7].mxu1  ;;  %v3426_v1 = vadd.f32 %v4467_v30, %v5945_v25  ;;  %v3453_v30 = vmax.f32 %v5973_v24, %v5989_v60 }
 0x240   :  { %4783 = vpow2.f32 %v3905_v48  ;;  %v3471_v37 = vmul.f32 0.01, %v3423_v0  ;;  %v3424_v54 = vadd.f32 %v5945_v25, %v3329_v36  ;;  %v3402_v24 = vadd.f32 %v5955_v43, %v5969_v23 }
 0x241   :  { %v3489_v15 = vmax.f32 %v3425_v12, %v3473_v58  ;;  %v3474_v47 = vmul.f32 0.01, %v3426_v1  ;;  %v3451_v58 = vmax.f32 %v5981_v40, %v3435_v56 }
 0x242   :  { %v3487_v19 = vmax.f32 %v3423_v0, %v3471_v37  ;;  %v3472_v16 = vmul.f32 0.01, %v3424_v54 }
 0x243   :  { %v3910_v33 = vmul.f32 -1.442695, %v3489_v15  ;;  %v3490_v32 = vmax.f32 %v3426_v1, %v3474_v47 }
 0x244   :  { %v3908_v42 = vmul.f32 -1.442695, %v3487_v19  ;;  %v5975_v29 = vpop.f32.mrb[8].mxu0  ;;  %v4470_v2 = vpop.f32.mrb[8].mxu1  ;;  %v3488_v14 = vmax.f32 %v3424_v54, %v3472_v16  ;;  %v3436_v19 = vmul.f32 0.01, %v5998_v26 }
 0x245   :  { %4785 = vpow2.f32 %v3910_v33  ;;  %v3429_v18 = vadd.f32 %v4470_v2, %v5945_v25  ;;  %v5978_v57 = vpop.f32.mrb[9].mxu0  ;;  %v3342_v55 = vpop.f32.mrb[9].mxu1  ;;  %v3911_v11 = vmul.f32 -1.442695, %v3490_v32  ;;  %v3454_v33 = vmax.f32 %v5993_v44, %v3438_v4 }
 0x246   :  { %4787 = vpow2.f32 %v3908_v42  ;;  %v5983_v35 = vpop.f32.mrb[10].mxu0  ;;  %v4471_v28 = vpop.f32.mrb[10].mxu1  ;;  %v3427_v52 = vadd.f32 %v5945_v25, %v3342_v55  ;;  %v3909_v53 = vmul.f32 -1.442695, %v3488_v14 }
 0x247   :  { %v4778_v13 = vpop.eup %4777  ;;  %v3477_v3 = vmul.f32 0.01, %v3429_v18  ;;  %v5986_v61 = vpop.f32.mrb[11].mxu0  ;;  %4789 = vpow2.f32 %v3911_v11  ;;  %v3430_v5 = vadd.f32 %v4471_v28, %v5945_v25 }
 0x248   :  { %v3345_v39 = vpop.f32.mrb[11].mxu1  ;;  %v4780_v63 = vpop.eup %4779  ;;  %v3549_v21 = vadd.f32 1.0, %v4778_v13  ;;  %v3475_v9 = vmul.f32 0.01, %v3427_v52  ;;  %v3400_v13 = vadd.f32 %v5969_v23, %v5958_v38 }
 0x249   :  { %v4782_v27 = vpop.eup %4781  ;;  %v3547_v49 = vadd.f32 1.0, %v4780_v63  ;;  %v3493_v8 = vmax.f32 %v3429_v18, %v3477_v3  ;;  %v3428_v46 = vadd.f32 %v5945_v25, %v3345_v39  ;;  %v3478_v12 = vmul.f32 0.01, %v3430_v5 }
 0x24a   :  { %v4784_v51 = vpop.eup %4783  ;;  %4791 = vrcp.f32 %v3549_v21  ;;  %v3550_v20 = vadd.f32 1.0, %v4782_v27  ;;  %v3491_v34 = vmax.f32 %v3427_v52, %v3475_v9  ;;  %v3403_v3 = vadd.f32 %v5961_v62, %v5969_v23 }
 0x24b   :  { %4793 = vrcp.f32 %v3547_v49  ;;  %v3548_v7 = vadd.f32 1.0, %v4784_v51  ;;  %v3914_v17 = vmul.f32 -1.442695, %v3493_v8  ;;  %v3476_v36 = vmul.f32 0.01, %v3428_v46 }
 0x24c   :  { %4795 = vrcp.f32 %v3550_v20  ;;  %v6001_v6 = vpop.f32.mrb[12].mxu0  ;;  %v4474_v45 = vpop.f32.mrb[12].mxu1  ;;  %v3912_v41 = vmul.f32 -1.442695, %v3491_v34  ;;  %v3494_v54 = vmax.f32 %v3430_v5, %v3478_v12  ;;  %v3452_v49 = vmax.f32 %v5998_v26, %v3436_v19 }
 0x24d   :  { %4797 = vrcp.f32 %v3548_v7  ;;  %v6005_v10 = vpop.f32.mrb[13].mxu0  ;;  %v3358_v59 = vpop.f32.mrb[13].mxu1  ;;  %v3433_v50 = vadd.f32 %v4474_v45, %v5945_v25  ;;  %v3492_v32 = vmax.f32 %v3428_v46, %v3476_v36  ;;  %v3441_v62 = vmul.f32 0.01, %v3402_v24 }
 0x24e   :  { %4799 = vpow2.f32 %v3909_v53  ;;  %v6008_v31 = vpop.f32.mrb[14].mxu0  ;;  %v4475_v48 = vpop.f32.mrb[14].mxu1  ;;  %v3915_v18 = vmul.f32 -1.442695, %v3494_v54  ;;  %v3431_v55 = vadd.f32 %v5945_v25, %v3358_v59  ;;  %v3439_v20 = vmul.f32 0.01, %v3400_v13 }
 0x24f   :  { %v4786_v0 = vpop.eup %4785  ;;  %4801 = vpow2.f32 %v3914_v17  ;;  %v6013_v37 = vpop.f32.mrb[15].mxu0  ;;  %v3481_v16 = vmul.f32 0.01, %v3433_v50  ;;  %v3913_v11 = vmul.f32 -1.442695, %v3492_v32  ;;  %v3434_v60 = vadd.f32 %v4475_v48, %v5945_v25 }
 0x250   :  { %v3361_v1 = vpop.f32.mrb[15].mxu1  ;;  %v4788_v15 = vpop.eup %4787  ;;  %v3553_v47 = vadd.f32 1.0, %v4786_v0  ;;  %4803 = vpow2.f32 %v3912_v41  ;;  %v3479_v52 = vmul.f32 0.01, %v3431_v55  ;;  %v3442_v34 = vmul.f32 0.01, %v3403_v3 }
 0x251   :  { %v3551_v42 = vadd.f32 1.0, %v4788_v15  ;;  %v4790_v2 = vpop.eup %4789  ;;  %v3497_v14 = vmax.f32 %v3433_v50, %v3481_v16  ;;  %v3482_v9 = vmul.f32 0.01, %v3434_v60  ;;  %v3432_v7 = vadd.f32 %v5945_v25, %v3361_v1 }
 0x252   :  { %4805 = vrcp.f32 %v3553_v47  ;;  %v3554_v40 = vadd.f32 1.0, %v4790_v2  ;;  %v3495_v44 = vmax.f32 %v3431_v55, %v3479_v52  ;;  %v3457_v46 = vmax.f32 %v3402_v24, %v3441_v62 }
 0x253   :  { %4807 = vrcp.f32 %v3551_v42  ;;  %v3918_v43 = vmul.f32 -1.442695, %v3497_v14  ;;  %v3498_v5 = vmax.f32 %v3434_v60, %v3482_v9  ;;  %v3480_v41 = vmul.f32 0.01, %v3432_v7 }
 0x254   :  { %v4792_v28 = vpop.eup %4791  ;;  %4809 = vpow2.f32 %v3915_v18  ;;  %v3916_v53 = vmul.f32 -1.442695, %v3495_v44  ;;  %v3455_v50 = vmax.f32 %v3400_v13, %v3439_v20  ;;  %v3401_v48 = vadd.f32 %v5969_v23, %v5963_v22 }
 0x255   :  { %v4794_v39 = vpop.eup %4793  ;;  %v3597_v63 = vmul.f32 %v4792_v28, %v3453_v30  ;;  %4811 = vrcp.f32 %v3554_v40  ;;  %v3919_v59 = vmul.f32 -1.442695, %v3498_v5  ;;  %v3496_v0 = vmax.f32 %v3432_v7, %v3480_v41 }
 0x256   :  { %v4796_v21 = vpop.eup %4795  ;;  %v3595_v27 = vmul.f32 %v4794_v39, %v3451_v58  ;;  %4813 = vpow2.f32 %v3913_v11  ;;  %v3458_v36 = vmax.f32 %v3403_v3, %v3442_v34  ;;  %v3406_v1 = vadd.f32 %v5975_v29, %v5969_v23 }
 0x257   :  { %v4798_v8 = vpop.eup %4797  ;;  %3613 = vst.msk [vmem:[%s6114_s5 + $0x10] sm:$0xff] %vm783_vm12, %v3597_v63  ;;  %v3598_v38 = vmul.f32 %v4796_v21, %v3454_v33  ;;  %4815 = vpow2.f32 %v3918_v43  ;;  %v3404_v47 = vadd.f32 %v5969_v23, %v5978_v57  ;;  %v3917_v54 = vmul.f32 -1.442695, %v3496_v0 }
 0x258   :  { %v4800_v51 = vpop.eup %4799  ;;  %3611 = vst.msk [vmem:[%s6114_s5] sm:$0xff] %vm783_vm12, %v3595_v27  ;;  %v3596_v56 = vmul.f32 %v4798_v8, %v3452_v49  ;;  %4817 = vpow2.f32 %v3916_v53  ;;  %v3440_v32 = vmul.f32 0.01, %v3401_v48  ;;  %v3445_v57 = vmul.f32 0.01, %v3406_v1 }
 0x259   :  { %v4802_v17 = vpop.eup %4801  ;;  %3614 = vst.msk [vmem:[%s6114_s5 + $0x18] sm:$0xff] %vm783_vm12, %v3598_v38  ;;  %v3552_v26 = vadd.f32 1.0, %v4800_v51  ;;  %v3443_v24 = vmul.f32 0.01, %v3404_v47  ;;  %v3407_v18 = vadd.f32 %v5983_v35, %v5969_v23  ;;  %v3405_v14 = vadd.f32 %v5969_v23, %v5986_v61 }
 0x25a   :  { %v4804_v45 = vpop.eup %4803  ;;  %3612 = vst.msk [vmem:[%s6114_s5 + $0x8] sm:$0xff] %vm783_vm12, %v3596_v56  ;;  %v3557_v4 = vadd.f32 1.0, %v4802_v17  ;;  %v3456_v11 = vmax.f32 %v3401_v48, %v3440_v32  ;;  %v3461_v13 = vmax.f32 %v3406_v1, %v3445_v57  ;;  %v3410_v3 = vadd.f32 %v6001_v6, %v5969_v23 }
 0x25b   :  { %4819 = vrcp.f32 %v3552_v26  ;;  %v3555_v25 = vadd.f32 1.0, %v4804_v45  ;;  %v3459_v43 = vmax.f32 %v3404_v47, %v3443_v24  ;;  %v3446_v60 = vmul.f32 0.01, %v3407_v18 }
 0x25c   :  { %v4806_v12 = vpop.eup %4805  ;;  %4821 = vrcp.f32 %v3557_v4  ;;  %v3444_v49 = vmul.f32 0.01, %v3405_v14  ;;  %v3408_v44 = vadd.f32 %v5969_v23, %v6005_v10  ;;  %v3449_v6 = vmul.f32 0.01, %v3410_v3 }
 0x25d   :  { %v4808_v30 = vpop.eup %4807  ;;  %v3601_v58 = vmul.f32 %v4806_v12, %v3457_v46  ;;  %4823 = vrcp.f32 %v3555_v25  ;;  %v3462_v62 = vmax.f32 %v3407_v18, %v3446_v60  ;;  %v3411_v53 = vadd.f32 %v6008_v31, %v5969_v23 }
 0x25e   :  { %v4810_v15 = vpop.eup %4809  ;;  %v3599_v19 = vmul.f32 %v4808_v30, %v3455_v50  ;;  %4825 = vpow2.f32 %v3919_v59  ;;  %v3460_v20 = vmax.f32 %v3405_v14, %v3444_v49  ;;  %v3447_v10 = vmul.f32 0.01, %v3408_v44 }
 0x25f   :  { %v4812_v33 = vpop.eup %4811  ;;  %3617 = vst.msk [vmem:[%s6114_s5 + $0x30] sm:$0xff] %vm783_vm12, %v3601_v58  ;;  %v3558_v22 = vadd.f32 1.0, %v4810_v15  ;;  %4827 = vpow2.f32 %v3917_v54  ;;  %v3465_v17 = vmax.f32 %v3410_v3, %v3449_v6  ;;  %v3409_v5 = vadd.f32 %v5969_v23, %v6013_v37 }
 0x260   :  { %v4814_v42 = vpop.eup %4813  ;;  %3615 = vst.msk [vmem:[%s6114_s5 + $0x20] sm:$0xff] %vm783_vm12, %v3599_v19  ;;  %v3602_v29 = vmul.f32 %v4812_v33, %v3458_v36  ;;  %v3463_v31 = vmax.f32 %v3408_v44, %v3447_v10  ;;  %v3450_v4 = vmul.f32 0.01, %v3411_v53 }
 0x261   :  { %v4816_v16 = vpop.eup %4815  ;;  %4829 = vrcp.f32 %v3558_v22  ;;  %v3556_v2 = vadd.f32 1.0, %v4814_v42  ;;  %v3448_v25 = vmul.f32 0.01, %v3409_v5 }
 0x262   :  { %3618 = vst.msk [vmem:[%s6114_s5 + $0x38] sm:$0xff] %vm783_vm12, %v3602_v29  ;;  %v3561_v55 = vadd.f32 1.0, %v4816_v16  ;;  %v4818_v40 = vpop.eup %4817  ;;  %v3466_v23 = vmax.f32 %v3411_v53, %v3450_v4 }
 0x263   :  { %4831 = vrcp.f32 %v3556_v2  ;;  %v3559_v52 = vadd.f32 1.0, %v4818_v40  ;;  %v3464_v12 = vmax.f32 %v3409_v5, %v3448_v25 }
 0x264   :  { %4833 = vrcp.f32 %v3561_v55 }
 0x265   :  { %v4820_v28 = vpop.eup %4819  ;;  %4835 = vrcp.f32 %v3559_v52 }
 0x266   :  { %v4822_v39 = vpop.eup %4821  ;;  %v3600_v63 = vmul.f32 %v4820_v28, %v3456_v11 }
 0x267   :  { %v4824_v21 = vpop.eup %4823  ;;  %v3605_v35 = vmul.f32 %v4822_v39, %v3461_v13 }
 0x268   :  { %v4826_v27 = vpop.eup %4825  ;;  %3616 = vst.msk [vmem:[%s6114_s5 + $0x28] sm:$0xff] %vm783_vm12, %v3600_v63  ;;  %v3603_v61 = vmul.f32 %v4824_v21, %v3459_v43 }
 0x269   :  { %3621 = vst.msk [vmem:[%s6114_s5 + $0x50] sm:$0xff] %vm783_vm12, %v3605_v35  ;;  %v3562_v8 = vadd.f32 1.0, %v4826_v27  ;;  %v4828_v38 = vpop.eup %4827 }
 0x26a   :  { %3619 = vst.msk [vmem:[%s6114_s5 + $0x40] sm:$0xff] %vm783_vm12, %v3603_v61  ;;  %v3560_v51 = vadd.f32 1.0, %v4828_v38 }
 0x26b   :  { %v4830_v9 = vpop.eup %4829  ;;  %4837 = vrcp.f32 %v3562_v8 }
 0x26c   :  { %v3606_v56 = vmul.f32 %v4830_v9, %v3462_v62  ;;  %4839 = vrcp.f32 %v3560_v51 }
 0x26d   :  { %v4832_v7 = vpop.eup %4831 }
 0x26e   :  { %v4834_v34 = vpop.eup %4833  ;;  %3622 = vst.msk [vmem:[%s6114_s5 + $0x58] sm:$0xff] %vm783_vm12, %v3606_v56  ;;  %v3604_v26 = vmul.f32 %v4832_v7, %v3460_v20 }
 0x26f   :  { %v3609_v45 = vmul.f32 %v4834_v34, %v3465_v17  ;;  %v4836_v41 = vpop.eup %4835 }
 0x270   :  { %3620 = vst.msk [vmem:[%s6114_s5 + $0x48] sm:$0xff] %vm783_vm12, %v3604_v26  ;;  %v3607_v46 = vmul.f32 %v4836_v41, %v3463_v31 }
 0x271   :  { %3625 = vst.msk [vmem:[%s6114_s5 + $0x70] sm:$0xff] %vm783_vm12, %v3609_v45 }
 0x272   :  { %3623 = vst.msk [vmem:[%s6114_s5 + $0x60] sm:$0xff] %vm783_vm12, %v3607_v46 }
 0x275   :  { %v4838_v37 = vpop.eup %4837 }
 0x276   :  { %v3610_v59 = vmul.f32 %v4838_v37, %v3466_v23  ;;  %v4840_v50 = vpop.eup %4839 }
 0x277   :  { %v3608_v48 = vmul.f32 %v4840_v50, %v3464_v12 }
 0x278   :  { %3626 = vst.msk [vmem:[%s6114_s5 + $0x78] sm:$0xff] %vm783_vm12, %v3610_v59 }
 0x279   :  { %3624 = vst.msk [vmem:[%s6114_s5 + $0x68] sm:$0xff] %vm783_vm12, %v3608_v48 }
 0x27a   :  { %3631 = vsyncpa [#allocation4], 1 }

</bundles_post_ra>
